<compile_context>
chip_gen: v6e
topology: v6e:2x2x1
jax: 0.10.0
libtpu: 0.0.40
codegen_flags: <defaults>
</compile_context>

<pallas_src>
import functools

import jax
import jax.numpy as jnp
from jax import lax
from jax.experimental import pallas as pl
from jax.experimental.pallas import tpu as pltpu


# ----------------------------------------------------------------------------
# context_anchor (glue, plain JAX): 8 context boxes per ROI, label column = 0.
# ----------------------------------------------------------------------------
def context_anchor_jax(rois, hh, hw):
    """rois: (R0, 5) float32 columns (batch_idx, x1, y1, x2, y2).

    Returns (R0, 8, 5): [label(=0), x1, y1, x2, y2] per context anchor.
    """
    R0 = rois.shape[0]
    x1 = rois[:, 1:2]
    y1 = rois[:, 2:3]
    x2 = rois[:, 3:4]
    y2 = rois[:, 4:5]
    w = x2 - x1
    h = y2 - y1
    ar = jnp.arange(3, dtype=rois.dtype)
    shift_x = x1 - w + w * ar + w / 2.0          # (R0, 3)
    shift_y = y1 - h + h * ar + h / 2.0          # (R0, 3)
    offset = jnp.concatenate([-w / 4.0, -h / 4.0, w / 4.0, h / 4.0], axis=1)  # (R0, 4)

    # np.meshgrid(shift_x, shift_y) with 'xy' indexing, raveled row-major.
    xx = jnp.broadcast_to(shift_x[:, None, :], (R0, 3, 3)).reshape(R0, 9)
    yy = jnp.broadcast_to(shift_y[:, :, None], (R0, 3, 3)).reshape(R0, 9)
    shifts = jnp.stack([xx, yy, xx, yy], axis=-1)      # (R0, 9, 4)
    gt = offset[:, None, :] + shifts                   # (R0, 9, 4)

    ww = gt[..., 2] - gt[..., 0] + 1.0
    hhh = gt[..., 3] - gt[..., 1] + 1.0
    min_size = 16.0
    keep = (
        (gt[..., 0] < 0)
        | (gt[..., 1] < 0)
        | (gt[..., 2] >= hw)
        | (gt[..., 3] >= hh)
        | (ww < min_size)
        | (hhh < min_size)
    )
    roi_boxes = rois[:, 1:5]                           # (R0, 4)
    gt = jnp.where(keep[..., None], roi_boxes[:, None, :], gt)

    # Drop the center anchor (index 4 of the 3x3 grid) -> 8 anchors per ROI.
    gt = jnp.concatenate([gt[:, :4, :], gt[:, 5:, :]], axis=1)  # (R0, 8, 4)

    # TODO(synk): the reference's overlap-based relabeling uses the undefined
    # bbox_overlaps_batch; labels are reset to 0 at the end regardless, so the
    # label column is all zeros here.
    labels = jnp.zeros((R0, 8, 1), gt.dtype)
    return jnp.concatenate([labels, gt], axis=-1)      # (R0, 8, 5)


# ----------------------------------------------------------------------------
# Pallas ROI max-pooling kernel (two-stage masked reduction, per-ph row store).
# ----------------------------------------------------------------------------
def _roi_pool_kernel(bidx_ref, hs_ref, he_ref, ws_ref, we_ref,
                     feat_ref, out_ref, *, ph_bins, pw_bins, roi_axis):
    # feat_ref block: (1, H, Wp, Ctile) NHWC slab of this ROI's batch element.
    # out_ref  block: (1, PH*PW, Ctile) pooled result for this ROI.
    r = pl.program_id(roi_axis)
    feat = feat_ref[0]                                  # (H, Wp, Ct), feat dtype
    H, W, _ = feat.shape

    h_idx = lax.broadcasted_iota(jnp.int32, (H, 1), 0)  # (H, 1)
    w_idx = lax.broadcasted_iota(jnp.int32, (W, 1), 0)  # (W, 1)

    # Hoist all w-bin masks / empty flags out of the ph loop.
    wmasks = []
    w_empty = []
    for pw in range(pw_bins):
        ws = ws_ref[r * pw_bins + pw]
        we = we_ref[r * pw_bins + pw]
        wmasks.append((w_idx >= ws) & (w_idx < we))     # (W, 1)
        w_empty.append(we <= ws)

    # Compute in the feature dtype (bf16 stays bf16 -> 2x VPU throughput on
    # v6e/v7x, half the slab bytes); only the final store casts if needed.
    neg_inf = jnp.array(-jnp.inf, dtype=feat.dtype)

    for ph in range(ph_bins):
        hs = hs_ref[r * ph_bins + ph]
        he = he_ref[r * ph_bins + ph]
        h_empty = he <= hs
        hmask = (h_idx >= hs) & (h_idx < he)            # (H, 1)
        # Stage 1: h-masked max over rows -> (W, Ct), reused by all pw bins.
        # NOTE: if the Mosaic dump ever shows the (H, W, Ct) masked temp being
        # materialized, rewrite this as a chunked running max over 8-row
        # sublane slices with a (W, Ct) accumulator.
        rowmax = jnp.max(jnp.where(hmask[:, :, None], feat, neg_inf), axis=0)
        row_vals = []
        for pw in range(pw_bins):
            # Stage 2: w-masked max over the (W, Ct) row maxima.
            val = jnp.max(jnp.where(wmasks[pw], rowmax, neg_inf),
                          axis=0, keepdims=True)        # (1, Ct)
            empty = jnp.logical_or(h_empty, w_empty[pw])
            row_vals.append(jnp.where(empty, jnp.zeros_like(val), val))
        # Assemble one (PW, Ct) row per ph and store it right away: keeps the
        # live-vreg peak at ~PW small temps + one row instead of PH*PW temps
        # (7x7 pooling with Ct=512 would otherwise spill), while every store
        # stays lane-dense in Ct.
        row = jnp.concatenate(row_vals, axis=0)         # (PW, Ct)
        out_ref[0, pl.ds(ph * pw_bins, pw_bins), :] = row.astype(out_ref.dtype)


# ----------------------------------------------------------------------------
# VMEM-budget-aware channel-tile planning.
# ----------------------------------------------------------------------------
def _vmem_capacity_bytes():
    try:
        return int(pltpu.get_tpu_info().vmem_capacity_bytes)
    except Exception:
        return 64 * 1024 * 1024   # conservative fallback (v7x per-TC VMEM)


def _plan_channel_tiling(C, H, W, itemsize, out_rows, budget_bytes):
    """Pick (c_tile, n_feature_buffers) so the VMEM working set fits the budget.

    Working set ~= n_buf * H*W*c_tile*itemsize   (feature slab)
                 + 2 * out_rows*c_tile*itemsize  (double-buffered output block).
    """
    def cost(ct, nbuf):
        return nbuf * H * W * ct * itemsize + 2 * out_rows * ct * itemsize

    if C % 128 != 0:
        # Cannot lane-align a sub-tile; keep full C. (Note: for C <= 128 most
        # lanes are idle and output stores are lane-masked — this kernel is
        # sized for C >= 256 detector heads; small C still runs correctly.)
        return C, (2 if cost(C, 2) <= budget_bytes else 1)

    for t in range(C, 0, -128):            # multiples of 128, descending
        if C % t != 0:
            continue
        if cost(t, 2) <= budget_bytes:
            return t, 2
        # Prefer a bigger tile single-buffered over a smaller tile double-
        # buffered: with batch-sorted ROIs the slab only changes B times over
        # R grid steps, so single-buffering exposes only B DMAs while halving
        # the dominant VMEM term (key lever for v7x's 64 MiB VMEM).
        if cost(t, 1) <= budget_bytes:
            return t, 1
    return 128, 1


def roi_pool_pallas(feat_nhwc, rois, pooled_height, pooled_width, spatial_scale):
    """feat_nhwc: (B, H, W, C); rois: (R, 5) [batch_idx, x1, y1, x2, y2].

    Returns (R, PH, PW, C) max-pooled features (classic Caffe/py-faster-rcnn
    RoIPool semantics, empty bins -> 0).
    """
    B, H, W, C = feat_nhwc.shape
    R = rois.shape[0]
    PH, PW = int(pooled_height), int(pooled_width)

    batch_idx = jnp.clip(rois[:, 0].astype(jnp.int32), 0, B - 1)

    def rnd(x):  # round-half-away-from-zero for non-negative coords (matches C round)
        return jnp.floor(x * spatial_scale + 0.5).astype(jnp.int32)

    start_w = rnd(rois[:, 1])
    start_h = rnd(rois[:, 2])
    end_w = rnd(rois[:, 3])
    end_h = rnd(rois[:, 4])
    roi_w = jnp.maximum(end_w - start_w + 1, 1).astype(jnp.float32)
    roi_h = jnp.maximum(end_h - start_h + 1, 1).astype(jnp.float32)
    bin_h = roi_h / float(PH)
    bin_w = roi_w / float(PW)

    ph = jnp.arange(PH, dtype=jnp.float32)
    pw = jnp.arange(PW, dtype=jnp.float32)
    hstart = jnp.floor(ph[None, :] * bin_h[:, None]).astype(jnp.int32) + start_h[:, None]
    hend = jnp.ceil((ph[None, :] + 1.0) * bin_h[:, None]).astype(jnp.int32) + start_h[:, None]
    wstart = jnp.floor(pw[None, :] * bin_w[:, None]).astype(jnp.int32) + start_w[:, None]
    wend = jnp.ceil((pw[None, :] + 1.0) * bin_w[:, None]).astype(jnp.int32) + start_w[:, None]
    hstart = jnp.clip(hstart, 0, H)
    hend = jnp.clip(hend, 0, H)
    wstart = jnp.clip(wstart, 0, W)   # clipped to the ORIGINAL W: padded cols never selected
    wend = jnp.clip(wend, 0, W)

    # Group ROIs by batch index so consecutive grid steps hit the same feature
    # slab (Pallas skips the HBM->VMEM DMA when the block index is unchanged).
    order = jnp.argsort(batch_idx)          # stable
    inv_order = jnp.argsort(order)
    batch_idx_s = batch_idx[order]
    hstart_s = hstart[order].reshape(-1)
    hend_s = hend[order].reshape(-1)
    wstart_s = wstart[order].reshape(-1)
    wend_s = wend[order].reshape(-1)

    # Pad W (sublane axis inside the kernel) up to a multiple of 8 so every
    # vreg tile is fully used; padded columns are masked out by wend <= W.
    if W % 8 != 0:
        Wp = ((W + 7) // 8) * 8
        feat_nhwc = jnp.pad(feat_nhwc, ((0, 0), (0, 0), (0, Wp - W), (0, 0)))
    else:
        Wp = W

    # VMEM budget / channel-tile plan (per-chip aware; explicit vmem limit so
    # large slabs don't trip the 16/32 MiB default scoped limits).
    itemsize = jnp.dtype(feat_nhwc.dtype).itemsize
    cap = _vmem_capacity_bytes()
    budget = int(cap * 0.70)                  # headroom for compiler scratch
    c_tile, n_feat_buf = _plan_channel_tiling(C, H, Wp, itemsize, PH * PW, budget)
    nc = C // c_tile
    vmem_limit = max(min(int(cap * 0.90), 100 * 1024 * 1024), 32 * 1024 * 1024)

    kernel = functools.partial(_roi_pool_kernel, ph_bins=PH, pw_bins=PW,
                               roi_axis=(0 if nc == 1 else 1))

    feat_spec_kwargs = {}
    if n_feat_buf == 1:
        # Single-buffer the slab when it is large: only B DMAs are exposed
        # (sorted ROIs), and it halves the dominant VMEM term.
        feat_spec_kwargs["pipeline_mode"] = pl.Buffered(1)

    if nc == 1:
        # Single channel tile: collapse the grid to (R,) so the ROI axis is
        # the (only) parallel axis — v7x shards it across its two TensorCores
        # instead of a useless size-1 channel axis.
        grid = (R,)
        feat_spec = pl.BlockSpec(
            (1, H, Wp, c_tile),
            lambda r, bidx, hs, he, ws, we: (bidx[r], 0, 0, 0),
            **feat_spec_kwargs)
        out_spec = pl.BlockSpec(
            (1, PH * PW, c_tile),
            lambda r, bidx, hs, he, ws, we: (r, 0, 0))
        dims = ("parallel",)
    else:
        # Channel axis outermost, ROI axis innermost: the (1,H,Wp,Ctile) slab
        # stays resident across all ROIs of a batch element.
        grid = (nc, R)
        feat_spec = pl.BlockSpec(
            (1, H, Wp, c_tile),
            lambda c, r, bidx, hs, he, ws, we: (bidx[r], 0, 0, c),
            **feat_spec_kwargs)
        out_spec = pl.BlockSpec(
            (1, PH * PW, c_tile),
            lambda c, r, bidx, hs, he, ws, we: (r, 0, c))
        dims = ("parallel", "parallel")

    grid_spec = pltpu.PrefetchScalarGridSpec(
        num_scalar_prefetch=5,
        grid=grid,
        in_specs=[feat_spec],
        out_specs=out_spec,
    )

    out = pl.pallas_call(
        kernel,
        out_shape=jax.ShapeDtypeStruct((R, PH * PW, C), feat_nhwc.dtype),
        grid_spec=grid_spec,
        compiler_params=pltpu.CompilerParams(
            dimension_semantics=dims,
            vmem_limit_bytes=vmem_limit),
    )(
        batch_idx_s,
        hstart_s,
        hend_s,
        wstart_s,
        wend_s,
        feat_nhwc,
    )

    # Un-sort back to the caller's ROI order and restore (R, PH, PW, C).
    out = out[inv_order].reshape(R, PH, PW, C)
    return out


# ----------------------------------------------------------------------------
# _RoIPooling module equivalent.
# ----------------------------------------------------------------------------
class RoIPoolingPallas:
    def __init__(self, pooled_height, pooled_width, spatial_scale):
        self.pooled_width = int(pooled_width)
        self.pooled_height = int(pooled_height)
        self.spatial_scale = float(spatial_scale)

    def __call__(self, features, rois, hh, hw):
        """features: (B, C, H, W) NCHW; rois: (R0, 5)."""
        gt_anchors = context_anchor_jax(rois, hh, hw).reshape(-1, 8, 5)      # (R0, 8, 5)
        # NOTE: column 0 of the context anchors is the label (always 0), so —
        # exactly like the reference module — all context boxes pool from
        # batch element 0; the real ROIs carry their true batch index.
        cat_rois = jnp.concatenate([rois.reshape(-1, 1, 5), gt_anchors],
                                   axis=1).reshape(-1, 5)                    # (9*R0, 5)

        feat_nhwc = jnp.transpose(features, (0, 2, 3, 1))                    # NCHW -> NHWC
        pooled = roi_pool_pallas(feat_nhwc, cat_rois,
                                 self.pooled_height, self.pooled_width,
                                 self.spatial_scale)                         # (9*R0, PH, PW, C)
        pooled = jnp.transpose(pooled, (0, 3, 1, 2))                         # (9*R0, C, PH, PW)
        # Matches torch .view(rois.size(0), -1, pooled_width, pooled_height):
        # raw row-major reinterpretation (no transpose of the pooled grid).
        pool_feat = pooled.reshape(rois.shape[0], -1,
                                   self.pooled_width, self.pooled_height)
        return pool_feat, cat_rois


# ----------------------------------------------------------------------------
# Demo
# ----------------------------------------------------------------------------
if __name__ == "__main__":
    key = jax.random.PRNGKey(0)
    kf, kx, ky, kw, kh = jax.random.split(key, 5)

    B, C, H, W = 2, 8, 16, 16
    spatial_scale = 1.0 / 16.0
    hh, hw = 256, 256          # image height / width in ROI coordinate space

    features = jax.random.normal(kf, (B, C, H, W), dtype=jnp.float32)

    R0 = 4                     # 2 ROIs per batch element
    x1 = jax.random.uniform(kx, (R0,), minval=10.0, maxval=110.0)
    y1 = jax.random.uniform(ky, (R0,), minval=10.0, maxval=110.0)
    bw = jax.random.uniform(kw, (R0,), minval=70.0, maxval=120.0)
    bh = jax.random.uniform(kh, (R0,), minval=70.0, maxval=120.0)
    x2 = jnp.minimum(x1 + bw, hw - 1.0)
    y2 = jnp.minimum(y1 + bh, hh - 1.0)
    bidx = jnp.array([0.0, 0.0, 1.0, 1.0], dtype=jnp.float32)
    rois = jnp.stack([bidx, x1, y1, x2, y2], axis=1).astype(jnp.float32)     # (4, 5)

    module = RoIPoolingPallas(pooled_height=4, pooled_width=4,
                              spatial_scale=spatial_scale)
    pool_feat, cat_rois = module(features, rois, hh, hw)
    jax.block_until_ready((pool_feat, cat_rois))

    assert pool_feat.shape == (R0, 9 * C, 4, 4), pool_feat.shape
    assert cat_rois.shape == (9 * R0, 5), cat_rois.shape
    print("KERNEL_OK")
</pallas_src>

<mosaic_0001>
module attributes {stable_mosaic.version = 11 : i64} {
  func.func @_roi_pool_kernel(%arg0: i32, %arg1: memref<36xi32, #tpu.memory_space<smem>>, %arg2: memref<144xi32, #tpu.memory_space<smem>>, %arg3: memref<144xi32, #tpu.memory_space<smem>>, %arg4: memref<144xi32, #tpu.memory_space<smem>>, %arg5: memref<144xi32, #tpu.memory_space<smem>>, %arg6: memref<1x16x16x8xf32, #tpu.memory_space<vmem>>, %arg7: memref<1x16x8xf32, #tpu.memory_space<vmem>>) attributes {dimension_semantics = [#tpu.dimension_semantics<parallel>], iteration_bounds = array<i64: 36>, scalar_prefetch = 5 : i64, scratch_operands = 0 : i64, tpu.core_type = #tpu.core_type<tc>, window_params = [{transform_indices = @transform_0, window_bounds = array<i64: 1, 16, 16, 8>}, {transform_indices = @transform_1, window_bounds = array<i64: 1, 16, 8>}]} {
    %c0 = arith.constant 0 : index
    %c0_0 = arith.constant 0 : index
    %c0_1 = arith.constant 0 : index
    %c0_2 = arith.constant 0 : index
    %0 = vector.load %arg6[%c0, %c0_0, %c0_1, %c0_2] : memref<1x16x16x8xf32, #tpu.memory_space<vmem>>, vector<1x16x16x8xf32>
    %1 = vector.shape_cast %0 : vector<1x16x16x8xf32> to vector<16x16x8xf32>
    %2 = tpu.iota {dimensions = array<i32: 0>} : vector<16x1xi32>
    %3 = tpu.iota {dimensions = array<i32: 0>} : vector<16x1xi32>
    %c4_i32 = arith.constant 4 : i32
    %4 = arith.muli %arg0, %c4_i32 : i32
    %c0_i32 = arith.constant 0 : i32
    %5 = arith.addi %4, %c0_i32 : i32
    %6 = arith.index_cast %5 : i32 to index
    %7 = memref.load %arg4[%6] : memref<144xi32, #tpu.memory_space<smem>>
    %c4_i32_3 = arith.constant 4 : i32
    %8 = arith.muli %arg0, %c4_i32_3 : i32
    %c0_i32_4 = arith.constant 0 : i32
    %9 = arith.addi %8, %c0_i32_4 : i32
    %10 = arith.index_cast %9 : i32 to index
    %11 = memref.load %arg5[%10] : memref<144xi32, #tpu.memory_space<smem>>
    %12 = vector.broadcast %7 : i32 to vector<16x1xi32>
    %13 = arith.cmpi sge, %3, %12 : vector<16x1xi32>
    %14 = vector.broadcast %11 : i32 to vector<16x1xi32>
    %15 = arith.cmpi slt, %3, %14 : vector<16x1xi32>
    %16 = arith.andi %13, %15 : vector<16x1xi1>
    %17 = arith.cmpi sle, %11, %7 : i32
    %c4_i32_5 = arith.constant 4 : i32
    %18 = arith.muli %arg0, %c4_i32_5 : i32
    %c1_i32 = arith.constant 1 : i32
    %19 = arith.addi %18, %c1_i32 : i32
    %20 = arith.index_cast %19 : i32 to index
    %21 = memref.load %arg4[%20] : memref<144xi32, #tpu.memory_space<smem>>
    %c4_i32_6 = arith.constant 4 : i32
    %22 = arith.muli %arg0, %c4_i32_6 : i32
    %c1_i32_7 = arith.constant 1 : i32
    %23 = arith.addi %22, %c1_i32_7 : i32
    %24 = arith.index_cast %23 : i32 to index
    %25 = memref.load %arg5[%24] : memref<144xi32, #tpu.memory_space<smem>>
    %26 = vector.broadcast %21 : i32 to vector<16x1xi32>
    %27 = arith.cmpi sge, %3, %26 : vector<16x1xi32>
    %28 = vector.broadcast %25 : i32 to vector<16x1xi32>
    %29 = arith.cmpi slt, %3, %28 : vector<16x1xi32>
    %30 = arith.andi %27, %29 : vector<16x1xi1>
    %31 = arith.cmpi sle, %25, %21 : i32
    %c4_i32_8 = arith.constant 4 : i32
    %32 = arith.muli %arg0, %c4_i32_8 : i32
    %c2_i32 = arith.constant 2 : i32
    %33 = arith.addi %32, %c2_i32 : i32
    %34 = arith.index_cast %33 : i32 to index
    %35 = memref.load %arg4[%34] : memref<144xi32, #tpu.memory_space<smem>>
    %c4_i32_9 = arith.constant 4 : i32
    %36 = arith.muli %arg0, %c4_i32_9 : i32
    %c2_i32_10 = arith.constant 2 : i32
    %37 = arith.addi %36, %c2_i32_10 : i32
    %38 = arith.index_cast %37 : i32 to index
    %39 = memref.load %arg5[%38] : memref<144xi32, #tpu.memory_space<smem>>
    %40 = vector.broadcast %35 : i32 to vector<16x1xi32>
    %41 = arith.cmpi sge, %3, %40 : vector<16x1xi32>
    %42 = vector.broadcast %39 : i32 to vector<16x1xi32>
    %43 = arith.cmpi slt, %3, %42 : vector<16x1xi32>
    %44 = arith.andi %41, %43 : vector<16x1xi1>
    %45 = arith.cmpi sle, %39, %35 : i32
    %c4_i32_11 = arith.constant 4 : i32
    %46 = arith.muli %arg0, %c4_i32_11 : i32
    %c3_i32 = arith.constant 3 : i32
    %47 = arith.addi %46, %c3_i32 : i32
    %48 = arith.index_cast %47 : i32 to index
    %49 = memref.load %arg4[%48] : memref<144xi32, #tpu.memory_space<smem>>
    %c4_i32_12 = arith.constant 4 : i32
    %50 = arith.muli %arg0, %c4_i32_12 : i32
    %c3_i32_13 = arith.constant 3 : i32
    %51 = arith.addi %50, %c3_i32_13 : i32
    %52 = arith.index_cast %51 : i32 to index
    %53 = memref.load %arg5[%52] : memref<144xi32, #tpu.memory_space<smem>>
    %54 = vector.broadcast %49 : i32 to vector<16x1xi32>
    %55 = arith.cmpi sge, %3, %54 : vector<16x1xi32>
    %56 = vector.broadcast %53 : i32 to vector<16x1xi32>
    %57 = arith.cmpi slt, %3, %56 : vector<16x1xi32>
    %58 = arith.andi %55, %57 : vector<16x1xi1>
    %59 = arith.cmpi sle, %53, %49 : i32
    %c4_i32_14 = arith.constant 4 : i32
    %60 = arith.muli %arg0, %c4_i32_14 : i32
    %c0_i32_15 = arith.constant 0 : i32
    %61 = arith.addi %60, %c0_i32_15 : i32
    %62 = arith.index_cast %61 : i32 to index
    %63 = memref.load %arg2[%62] : memref<144xi32, #tpu.memory_space<smem>>
    %c4_i32_16 = arith.constant 4 : i32
    %64 = arith.muli %arg0, %c4_i32_16 : i32
    %c0_i32_17 = arith.constant 0 : i32
    %65 = arith.addi %64, %c0_i32_17 : i32
    %66 = arith.index_cast %65 : i32 to index
    %67 = memref.load %arg3[%66] : memref<144xi32, #tpu.memory_space<smem>>
    %68 = arith.cmpi sle, %67, %63 : i32
    %69 = vector.broadcast %63 : i32 to vector<16x1xi32>
    %70 = arith.cmpi sge, %2, %69 : vector<16x1xi32>
    %71 = vector.broadcast %67 : i32 to vector<16x1xi32>
    %72 = arith.cmpi slt, %2, %71 : vector<16x1xi32>
    %73 = arith.andi %70, %72 : vector<16x1xi1>
    %74 = vector.shape_cast %73 : vector<16x1xi1> to vector<16x1x1xi1>
    %cst = arith.constant 0xFF800000 : f32
    %75 = vector.shape_cast %74 : vector<16x1x1xi1> to vector<16x1x1xi1>
    %76 = vector.broadcast %75 : vector<16x1x1xi1> to vector<16x16x8xi1>
    %77 = vector.broadcast %cst : f32 to vector<16x16x8xf32>
    %78 = arith.select %76, %1, %77 : vector<16x16x8xi1>, vector<16x16x8xf32>
    %cst_18 = arith.constant dense<0xFF800000> : vector<16x8xf32>
    %79 = vector.multi_reduction <maximumf>, %78, %cst_18 [0] : vector<16x16x8xf32> to vector<16x8xf32>
    %cst_19 = arith.constant 0xFF800000 : f32
    %80 = vector.shape_cast %16 : vector<16x1xi1> to vector<16x1xi1>
    %81 = vector.broadcast %80 : vector<16x1xi1> to vector<16x8xi1>
    %82 = vector.broadcast %cst_19 : f32 to vector<16x8xf32>
    %83 = arith.select %81, %79, %82 : vector<16x8xi1>, vector<16x8xf32>
    %cst_20 = arith.constant dense<0xFF800000> : vector<8xf32>
    %84 = vector.multi_reduction <maximumf>, %83, %cst_20 [0] : vector<16x8xf32> to vector<8xf32>
    %85 = vector.shape_cast %84 : vector<8xf32> to vector<1x8xf32>
    %86 = arith.ori %68, %17 : i1
    %cst_21 = arith.constant 0.000000e+00 : f32
    %87 = vector.broadcast %cst_21 : f32 to vector<1x8xf32>
    %88 = arith.select %86, %87, %85 : vector<1x8xf32>
    %cst_22 = arith.constant 0xFF800000 : f32
    %89 = vector.shape_cast %30 : vector<16x1xi1> to vector<16x1xi1>
    %90 = vector.broadcast %89 : vector<16x1xi1> to vector<16x8xi1>
    %91 = vector.broadcast %cst_22 : f32 to vector<16x8xf32>
    %92 = arith.select %90, %79, %91 : vector<16x8xi1>, vector<16x8xf32>
    %cst_23 = arith.constant dense<0xFF800000> : vector<8xf32>
    %93 = vector.multi_reduction <maximumf>, %92, %cst_23 [0] : vector<16x8xf32> to vector<8xf32>
    %94 = vector.shape_cast %93 : vector<8xf32> to vector<1x8xf32>
    %95 = arith.ori %68, %31 : i1
    %cst_24 = arith.constant 0.000000e+00 : f32
    %96 = vector.broadcast %cst_24 : f32 to vector<1x8xf32>
    %97 = arith.select %95, %96, %94 : vector<1x8xf32>
    %cst_25 = arith.constant 0xFF800000 : f32
    %98 = vector.shape_cast %44 : vector<16x1xi1> to vector<16x1xi1>
    %99 = vector.broadcast %98 : vector<16x1xi1> to vector<16x8xi1>
    %100 = vector.broadcast %cst_25 : f32 to vector<16x8xf32>
    %101 = arith.select %99, %79, %100 : vector<16x8xi1>, vector<16x8xf32>
    %cst_26 = arith.constant dense<0xFF800000> : vector<8xf32>
    %102 = vector.multi_reduction <maximumf>, %101, %cst_26 [0] : vector<16x8xf32> to vector<8xf32>
    %103 = vector.shape_cast %102 : vector<8xf32> to vector<1x8xf32>
    %104 = arith.ori %68, %45 : i1
    %cst_27 = arith.constant 0.000000e+00 : f32
    %105 = vector.broadcast %cst_27 : f32 to vector<1x8xf32>
    %106 = arith.select %104, %105, %103 : vector<1x8xf32>
    %cst_28 = arith.constant 0xFF800000 : f32
    %107 = vector.shape_cast %58 : vector<16x1xi1> to vector<16x1xi1>
    %108 = vector.broadcast %107 : vector<16x1xi1> to vector<16x8xi1>
    %109 = vector.broadcast %cst_28 : f32 to vector<16x8xf32>
    %110 = arith.select %108, %79, %109 : vector<16x8xi1>, vector<16x8xf32>
    %cst_29 = arith.constant dense<0xFF800000> : vector<8xf32>
    %111 = vector.multi_reduction <maximumf>, %110, %cst_29 [0] : vector<16x8xf32> to vector<8xf32>
    %112 = vector.shape_cast %111 : vector<8xf32> to vector<1x8xf32>
    %113 = arith.ori %68, %59 : i1
    %cst_30 = arith.constant 0.000000e+00 : f32
    %114 = vector.broadcast %cst_30 : f32 to vector<1x8xf32>
    %115 = arith.select %113, %114, %112 : vector<1x8xf32>
    %116 = tpu.concatenate %88, %97, %106, %115 in 0 : vector<1x8xf32>, vector<1x8xf32>, vector<1x8xf32>, vector<1x8xf32> -> vector<4x8xf32>
    %c0_31 = arith.constant 0 : index
    %c0_32 = arith.constant 0 : index
    %c0_33 = arith.constant 0 : index
    %117 = vector.load %arg7[%c0_31, %c0_32, %c0_33] : memref<1x16x8xf32, #tpu.memory_space<vmem>>, vector<1x4x8xf32>
    %118 = vector.shape_cast %117 : vector<1x4x8xf32> to vector<4x8xf32>
    %119 = vector.shape_cast %116 : vector<4x8xf32> to vector<1x4x8xf32>
    tpu.vector_store %arg7[%c0_31, %c0_32, %c0_33], %119 {strides = array<i32>} : memref<1x16x8xf32, #tpu.memory_space<vmem>>, vector<1x4x8xf32>,
    %c4_i32_34 = arith.constant 4 : i32
    %120 = arith.muli %arg0, %c4_i32_34 : i32
    %c1_i32_35 = arith.constant 1 : i32
    %121 = arith.addi %120, %c1_i32_35 : i32
    %122 = arith.index_cast %121 : i32 to index
    %123 = memref.load %arg2[%122] : memref<144xi32, #tpu.memory_space<smem>>
    %c4_i32_36 = arith.constant 4 : i32
    %124 = arith.muli %arg0, %c4_i32_36 : i32
    %c1_i32_37 = arith.constant 1 : i32
    %125 = arith.addi %124, %c1_i32_37 : i32
    %126 = arith.index_cast %125 : i32 to index
    %127 = memref.load %arg3[%126] : memref<144xi32, #tpu.memory_space<smem>>
    %128 = arith.cmpi sle, %127, %123 : i32
    %129 = vector.broadcast %123 : i32 to vector<16x1xi32>
    %130 = arith.cmpi sge, %2, %129 : vector<16x1xi32>
    %131 = vector.broadcast %127 : i32 to vector<16x1xi32>
    %132 = arith.cmpi slt, %2, %131 : vector<16x1xi32>
    %133 = arith.andi %130, %132 : vector<16x1xi1>
    %134 = vector.shape_cast %133 : vector<16x1xi1> to vector<16x1x1xi1>
    %cst_38 = arith.constant 0xFF800000 : f32
    %135 = vector.shape_cast %134 : vector<16x1x1xi1> to vector<16x1x1xi1>
    %136 = vector.broadcast %135 : vector<16x1x1xi1> to vector<16x16x8xi1>
    %137 = vector.broadcast %cst_38 : f32 to vector<16x16x8xf32>
    %138 = arith.select %136, %1, %137 : vector<16x16x8xi1>, vector<16x16x8xf32>
    %cst_39 = arith.constant dense<0xFF800000> : vector<16x8xf32>
    %139 = vector.multi_reduction <maximumf>, %138, %cst_39 [0] : vector<16x16x8xf32> to vector<16x8xf32>
    %cst_40 = arith.constant 0xFF800000 : f32
    %140 = vector.shape_cast %16 : vector<16x1xi1> to vector<16x1xi1>
    %141 = vector.broadcast %140 : vector<16x1xi1> to vector<16x8xi1>
    %142 = vector.broadcast %cst_40 : f32 to vector<16x8xf32>
    %143 = arith.select %141, %139, %142 : vector<16x8xi1>, vector<16x8xf32>
    %cst_41 = arith.constant dense<0xFF800000> : vector<8xf32>
    %144 = vector.multi_reduction <maximumf>, %143, %cst_41 [0] : vector<16x8xf32> to vector<8xf32>
    %145 = vector.shape_cast %144 : vector<8xf32> to vector<1x8xf32>
    %146 = arith.ori %128, %17 : i1
    %cst_42 = arith.constant 0.000000e+00 : f32
    %147 = vector.broadcast %cst_42 : f32 to vector<1x8xf32>
    %148 = arith.select %146, %147, %145 : vector<1x8xf32>
    %cst_43 = arith.constant 0xFF800000 : f32
    %149 = vector.shape_cast %30 : vector<16x1xi1> to vector<16x1xi1>
    %150 = vector.broadcast %149 : vector<16x1xi1> to vector<16x8xi1>
    %151 = vector.broadcast %cst_43 : f32 to vector<16x8xf32>
    %152 = arith.select %150, %139, %151 : vector<16x8xi1>, vector<16x8xf32>
    %cst_44 = arith.constant dense<0xFF800000> : vector<8xf32>
    %153 = vector.multi_reduction <maximumf>, %152, %cst_44 [0] : vector<16x8xf32> to vector<8xf32>
    %154 = vector.shape_cast %153 : vector<8xf32> to vector<1x8xf32>
    %155 = arith.ori %128, %31 : i1
    %cst_45 = arith.constant 0.000000e+00 : f32
    %156 = vector.broadcast %cst_45 : f32 to vector<1x8xf32>
    %157 = arith.select %155, %156, %154 : vector<1x8xf32>
    %cst_46 = arith.constant 0xFF800000 : f32
    %158 = vector.shape_cast %44 : vector<16x1xi1> to vector<16x1xi1>
    %159 = vector.broadcast %158 : vector<16x1xi1> to vector<16x8xi1>
    %160 = vector.broadcast %cst_46 : f32 to vector<16x8xf32>
    %161 = arith.select %159, %139, %160 : vector<16x8xi1>, vector<16x8xf32>
    %cst_47 = arith.constant dense<0xFF800000> : vector<8xf32>
    %162 = vector.multi_reduction <maximumf>, %161, %cst_47 [0] : vector<16x8xf32> to vector<8xf32>
    %163 = vector.shape_cast %162 : vector<8xf32> to vector<1x8xf32>
    %164 = arith.ori %128, %45 : i1
    %cst_48 = arith.constant 0.000000e+00 : f32
    %165 = vector.broadcast %cst_48 : f32 to vector<1x8xf32>
    %166 = arith.select %164, %165, %163 : vector<1x8xf32>
    %cst_49 = arith.constant 0xFF800000 : f32
    %167 = vector.shape_cast %58 : vector<16x1xi1> to vector<16x1xi1>
    %168 = vector.broadcast %167 : vector<16x1xi1> to vector<16x8xi1>
    %169 = vector.broadcast %cst_49 : f32 to vector<16x8xf32>
    %170 = arith.select %168, %139, %169 : vector<16x8xi1>, vector<16x8xf32>
    %cst_50 = arith.constant dense<0xFF800000> : vector<8xf32>
    %171 = vector.multi_reduction <maximumf>, %170, %cst_50 [0] : vector<16x8xf32> to vector<8xf32>
    %172 = vector.shape_cast %171 : vector<8xf32> to vector<1x8xf32>
    %173 = arith.ori %128, %59 : i1
    %cst_51 = arith.constant 0.000000e+00 : f32
    %174 = vector.broadcast %cst_51 : f32 to vector<1x8xf32>
    %175 = arith.select %173, %174, %172 : vector<1x8xf32>
    %176 = tpu.concatenate %148, %157, %166, %175 in 0 : vector<1x8xf32>, vector<1x8xf32>, vector<1x8xf32>, vector<1x8xf32> -> vector<4x8xf32>
    %c0_52 = arith.constant 0 : index
    %c4 = arith.constant 4 : index
    %c0_53 = arith.constant 0 : index
    %177 = vector.load %arg7[%c0_52, %c4, %c0_53] : memref<1x16x8xf32, #tpu.memory_space<vmem>>, vector<1x4x8xf32>
    %178 = vector.shape_cast %177 : vector<1x4x8xf32> to vector<4x8xf32>
    %179 = vector.shape_cast %176 : vector<4x8xf32> to vector<1x4x8xf32>
    tpu.vector_store %arg7[%c0_52, %c4, %c0_53], %179 {strides = array<i32>} : memref<1x16x8xf32, #tpu.memory_space<vmem>>, vector<1x4x8xf32>,
    %c4_i32_54 = arith.constant 4 : i32
    %180 = arith.muli %arg0, %c4_i32_54 : i32
    %c2_i32_55 = arith.constant 2 : i32
    %181 = arith.addi %180, %c2_i32_55 : i32
    %182 = arith.index_cast %181 : i32 to index
    %183 = memref.load %arg2[%182] : memref<144xi32, #tpu.memory_space<smem>>
    %c4_i32_56 = arith.constant 4 : i32
    %184 = arith.muli %arg0, %c4_i32_56 : i32
    %c2_i32_57 = arith.constant 2 : i32
    %185 = arith.addi %184, %c2_i32_57 : i32
    %186 = arith.index_cast %185 : i32 to index
    %187 = memref.load %arg3[%186] : memref<144xi32, #tpu.memory_space<smem>>
    %188 = arith.cmpi sle, %187, %183 : i32
    %189 = vector.broadcast %183 : i32 to vector<16x1xi32>
    %190 = arith.cmpi sge, %2, %189 : vector<16x1xi32>
    %191 = vector.broadcast %187 : i32 to vector<16x1xi32>
    %192 = arith.cmpi slt, %2, %191 : vector<16x1xi32>
    %193 = arith.andi %190, %192 : vector<16x1xi1>
    %194 = vector.shape_cast %193 : vector<16x1xi1> to vector<16x1x1xi1>
    %cst_58 = arith.constant 0xFF800000 : f32
    %195 = vector.shape_cast %194 : vector<16x1x1xi1> to vector<16x1x1xi1>
    %196 = vector.broadcast %195 : vector<16x1x1xi1> to vector<16x16x8xi1>
    %197 = vector.broadcast %cst_58 : f32 to vector<16x16x8xf32>
    %198 = arith.select %196, %1, %197 : vector<16x16x8xi1>, vector<16x16x8xf32>
    %cst_59 = arith.constant dense<0xFF800000> : vector<16x8xf32>
    %199 = vector.multi_reduction <maximumf>, %198, %cst_59 [0] : vector<16x16x8xf32> to vector<16x8xf32>
    %cst_60 = arith.constant 0xFF800000 : f32
    %200 = vector.shape_cast %16 : vector<16x1xi1> to vector<16x1xi1>
    %201 = vector.broadcast %200 : vector<16x1xi1> to vector<16x8xi1>
    %202 = vector.broadcast %cst_60 : f32 to vector<16x8xf32>
    %203 = arith.select %201, %199, %202 : vector<16x8xi1>, vector<16x8xf32>
    %cst_61 = arith.constant dense<0xFF800000> : vector<8xf32>
    %204 = vector.multi_reduction <maximumf>, %203, %cst_61 [0] : vector<16x8xf32> to vector<8xf32>
    %205 = vector.shape_cast %204 : vector<8xf32> to vector<1x8xf32>
    %206 = arith.ori %188, %17 : i1
    %cst_62 = arith.constant 0.000000e+00 : f32
    %207 = vector.broadcast %cst_62 : f32 to vector<1x8xf32>
    %208 = arith.select %206, %207, %205 : vector<1x8xf32>
    %cst_63 = arith.constant 0xFF800000 : f32
    %209 = vector.shape_cast %30 : vector<16x1xi1> to vector<16x1xi1>
    %210 = vector.broadcast %209 : vector<16x1xi1> to vector<16x8xi1>
    %211 = vector.broadcast %cst_63 : f32 to vector<16x8xf32>
    %212 = arith.select %210, %199, %211 : vector<16x8xi1>, vector<16x8xf32>
    %cst_64 = arith.constant dense<0xFF800000> : vector<8xf32>
    %213 = vector.multi_reduction <maximumf>, %212, %cst_64 [0] : vector<16x8xf32> to vector<8xf32>
    %214 = vector.shape_cast %213 : vector<8xf32> to vector<1x8xf32>
    %215 = arith.ori %188, %31 : i1
    %cst_65 = arith.constant 0.000000e+00 : f32
    %216 = vector.broadcast %cst_65 : f32 to vector<1x8xf32>
    %217 = arith.select %215, %216, %214 : vector<1x8xf32>
    %cst_66 = arith.constant 0xFF800000 : f32
    %218 = vector.shape_cast %44 : vector<16x1xi1> to vector<16x1xi1>
    %219 = vector.broadcast %218 : vector<16x1xi1> to vector<16x8xi1>
    %220 = vector.broadcast %cst_66 : f32 to vector<16x8xf32>
    %221 = arith.select %219, %199, %220 : vector<16x8xi1>, vector<16x8xf32>
    %cst_67 = arith.constant dense<0xFF800000> : vector<8xf32>
    %222 = vector.multi_reduction <maximumf>, %221, %cst_67 [0] : vector<16x8xf32> to vector<8xf32>
    %223 = vector.shape_cast %222 : vector<8xf32> to vector<1x8xf32>
    %224 = arith.ori %188, %45 : i1
    %cst_68 = arith.constant 0.000000e+00 : f32
    %225 = vector.broadcast %cst_68 : f32 to vector<1x8xf32>
    %226 = arith.select %224, %225, %223 : vector<1x8xf32>
    %cst_69 = arith.constant 0xFF800000 : f32
    %227 = vector.shape_cast %58 : vector<16x1xi1> to vector<16x1xi1>
    %228 = vector.broadcast %227 : vector<16x1xi1> to vector<16x8xi1>
    %229 = vector.broadcast %cst_69 : f32 to vector<16x8xf32>
    %230 = arith.select %228, %199, %229 : vector<16x8xi1>, vector<16x8xf32>
    %cst_70 = arith.constant dense<0xFF800000> : vector<8xf32>
    %231 = vector.multi_reduction <maximumf>, %230, %cst_70 [0] : vector<16x8xf32> to vector<8xf32>
    %232 = vector.shape_cast %231 : vector<8xf32> to vector<1x8xf32>
    %233 = arith.ori %188, %59 : i1
    %cst_71 = arith.constant 0.000000e+00 : f32
    %234 = vector.broadcast %cst_71 : f32 to vector<1x8xf32>
    %235 = arith.select %233, %234, %232 : vector<1x8xf32>
    %236 = tpu.concatenate %208, %217, %226, %235 in 0 : vector<1x8xf32>, vector<1x8xf32>, vector<1x8xf32>, vector<1x8xf32> -> vector<4x8xf32>
    %c0_72 = arith.constant 0 : index
    %c8 = arith.constant 8 : index
    %c0_73 = arith.constant 0 : index
    %237 = vector.load %arg7[%c0_72, %c8, %c0_73] : memref<1x16x8xf32, #tpu.memory_space<vmem>>, vector<1x4x8xf32>
    %238 = vector.shape_cast %237 : vector<1x4x8xf32> to vector<4x8xf32>
    %239 = vector.shape_cast %236 : vector<4x8xf32> to vector<1x4x8xf32>
    tpu.vector_store %arg7[%c0_72, %c8, %c0_73], %239 {strides = array<i32>} : memref<1x16x8xf32, #tpu.memory_space<vmem>>, vector<1x4x8xf32>,
    %c4_i32_74 = arith.constant 4 : i32
    %240 = arith.muli %arg0, %c4_i32_74 : i32
    %c3_i32_75 = arith.constant 3 : i32
    %241 = arith.addi %240, %c3_i32_75 : i32
    %242 = arith.index_cast %241 : i32 to index
    %243 = memref.load %arg2[%242] : memref<144xi32, #tpu.memory_space<smem>>
    %c4_i32_76 = arith.constant 4 : i32
    %244 = arith.muli %arg0, %c4_i32_76 : i32
    %c3_i32_77 = arith.constant 3 : i32
    %245 = arith.addi %244, %c3_i32_77 : i32
    %246 = arith.index_cast %245 : i32 to index
    %247 = memref.load %arg3[%246] : memref<144xi32, #tpu.memory_space<smem>>
    %248 = arith.cmpi sle, %247, %243 : i32
    %249 = vector.broadcast %243 : i32 to vector<16x1xi32>
    %250 = arith.cmpi sge, %2, %249 : vector<16x1xi32>
    %251 = vector.broadcast %247 : i32 to vector<16x1xi32>
    %252 = arith.cmpi slt, %2, %251 : vector<16x1xi32>
    %253 = arith.andi %250, %252 : vector<16x1xi1>
    %254 = vector.shape_cast %253 : vector<16x1xi1> to vector<16x1x1xi1>
    %cst_78 = arith.constant 0xFF800000 : f32
    %255 = vector.shape_cast %254 : vector<16x1x1xi1> to vector<16x1x1xi1>
    %256 = vector.broadcast %255 : vector<16x1x1xi1> to vector<16x16x8xi1>
    %257 = vector.broadcast %cst_78 : f32 to vector<16x16x8xf32>
    %258 = arith.select %256, %1, %257 : vector<16x16x8xi1>, vector<16x16x8xf32>
    %cst_79 = arith.constant dense<0xFF800000> : vector<16x8xf32>
    %259 = vector.multi_reduction <maximumf>, %258, %cst_79 [0] : vector<16x16x8xf32> to vector<16x8xf32>
    %cst_80 = arith.constant 0xFF800000 : f32
    %260 = vector.shape_cast %16 : vector<16x1xi1> to vector<16x1xi1>
    %261 = vector.broadcast %260 : vector<16x1xi1> to vector<16x8xi1>
    %262 = vector.broadcast %cst_80 : f32 to vector<16x8xf32>
    %263 = arith.select %261, %259, %262 : vector<16x8xi1>, vector<16x8xf32>
    %cst_81 = arith.constant dense<0xFF800000> : vector<8xf32>
    %264 = vector.multi_reduction <maximumf>, %263, %cst_81 [0] : vector<16x8xf32> to vector<8xf32>
    %265 = vector.shape_cast %264 : vector<8xf32> to vector<1x8xf32>
    %266 = arith.ori %248, %17 : i1
    %cst_82 = arith.constant 0.000000e+00 : f32
    %267 = vector.broadcast %cst_82 : f32 to vector<1x8xf32>
    %268 = arith.select %266, %267, %265 : vector<1x8xf32>
    %cst_83 = arith.constant 0xFF800000 : f32
    %269 = vector.shape_cast %30 : vector<16x1xi1> to vector<16x1xi1>
    %270 = vector.broadcast %269 : vector<16x1xi1> to vector<16x8xi1>
    %271 = vector.broadcast %cst_83 : f32 to vector<16x8xf32>
    %272 = arith.select %270, %259, %271 : vector<16x8xi1>, vector<16x8xf32>
    %cst_84 = arith.constant dense<0xFF800000> : vector<8xf32>
    %273 = vector.multi_reduction <maximumf>, %272, %cst_84 [0] : vector<16x8xf32> to vector<8xf32>
    %274 = vector.shape_cast %273 : vector<8xf32> to vector<1x8xf32>
    %275 = arith.ori %248, %31 : i1
    %cst_85 = arith.constant 0.000000e+00 : f32
    %276 = vector.broadcast %cst_85 : f32 to vector<1x8xf32>
    %277 = arith.select %275, %276, %274 : vector<1x8xf32>
    %cst_86 = arith.constant 0xFF800000 : f32
    %278 = vector.shape_cast %44 : vector<16x1xi1> to vector<16x1xi1>
    %279 = vector.broadcast %278 : vector<16x1xi1> to vector<16x8xi1>
    %280 = vector.broadcast %cst_86 : f32 to vector<16x8xf32>
    %281 = arith.select %279, %259, %280 : vector<16x8xi1>, vector<16x8xf32>
    %cst_87 = arith.constant dense<0xFF800000> : vector<8xf32>
    %282 = vector.multi_reduction <maximumf>, %281, %cst_87 [0] : vector<16x8xf32> to vector<8xf32>
    %283 = vector.shape_cast %282 : vector<8xf32> to vector<1x8xf32>
    %284 = arith.ori %248, %45 : i1
    %cst_88 = arith.constant 0.000000e+00 : f32
    %285 = vector.broadcast %cst_88 : f32 to vector<1x8xf32>
    %286 = arith.select %284, %285, %283 : vector<1x8xf32>
    %cst_89 = arith.constant 0xFF800000 : f32
    %287 = vector.shape_cast %58 : vector<16x1xi1> to vector<16x1xi1>
    %288 = vector.broadcast %287 : vector<16x1xi1> to vector<16x8xi1>
    %289 = vector.broadcast %cst_89 : f32 to vector<16x8xf32>
    %290 = arith.select %288, %259, %289 : vector<16x8xi1>, vector<16x8xf32>
    %cst_90 = arith.constant dense<0xFF800000> : vector<8xf32>
    %291 = vector.multi_reduction <maximumf>, %290, %cst_90 [0] : vector<16x8xf32> to vector<8xf32>
    %292 = vector.shape_cast %291 : vector<8xf32> to vector<1x8xf32>
    %293 = arith.ori %248, %59 : i1
    %cst_91 = arith.constant 0.000000e+00 : f32
    %294 = vector.broadcast %cst_91 : f32 to vector<1x8xf32>
    %295 = arith.select %293, %294, %292 : vector<1x8xf32>
    %296 = tpu.concatenate %268, %277, %286, %295 in 0 : vector<1x8xf32>, vector<1x8xf32>, vector<1x8xf32>, vector<1x8xf32> -> vector<4x8xf32>
    %c0_92 = arith.constant 0 : index
    %c12 = arith.constant 12 : index
    %c0_93 = arith.constant 0 : index
    %297 = vector.load %arg7[%c0_92, %c12, %c0_93] : memref<1x16x8xf32, #tpu.memory_space<vmem>>, vector<1x4x8xf32>
    %298 = vector.shape_cast %297 : vector<1x4x8xf32> to vector<4x8xf32>
    %299 = vector.shape_cast %296 : vector<4x8xf32> to vector<1x4x8xf32>
    tpu.vector_store %arg7[%c0_92, %c12, %c0_93], %299 {strides = array<i32>} : memref<1x16x8xf32, #tpu.memory_space<vmem>>, vector<1x4x8xf32>,
    return
  }
  func.func @transform_0(%arg0: i32, %arg1: memref<36xi32, #tpu.memory_space<smem>>, %arg2: memref<144xi32, #tpu.memory_space<smem>>, %arg3: memref<144xi32, #tpu.memory_space<smem>>, %arg4: memref<144xi32, #tpu.memory_space<smem>>, %arg5: memref<144xi32, #tpu.memory_space<smem>>) -> (i32, i32, i32, i32) {
    %0 = arith.index_cast %arg0 : i32 to index
    %1 = memref.load %arg1[%0] : memref<36xi32, #tpu.memory_space<smem>>
    %c0_i32 = arith.constant 0 : i32
    %c0_i32_0 = arith.constant 0 : i32
    %c0_i32_1 = arith.constant 0 : i32
    %c0_i32_2 = arith.constant 0 : i32
    return %1, %c0_i32, %c0_i32_0, %c0_i32_1 : i32, i32, i32, i32
  }
  func.func @transform_1(%arg0: i32, %arg1: memref<36xi32, #tpu.memory_space<smem>>, %arg2: memref<144xi32, #tpu.memory_space<smem>>, %arg3: memref<144xi32, #tpu.memory_space<smem>>, %arg4: memref<144xi32, #tpu.memory_space<smem>>, %arg5: memref<144xi32, #tpu.memory_space<smem>>) -> (i32, i32, i32) {
    %c0_i32 = arith.constant 0 : i32
    %c0_i32_0 = arith.constant 0 : i32
    %c0_i32_1 = arith.constant 0 : i32
    return %arg0, %c0_i32, %c0_i32_0 : i32, i32, i32
  }
}

</mosaic_0001>

<bundles_post_ra>
// kernel: tpu_custom_call.1
= control target key start
LH: loop header
LB: loop body
LE: loop exit
PB: predicated region body
PF: predicated region fallthrough
CT: control target
= control target key end

     0   :  { %s3593_s0 = inlined_call_operand.vmem [shape: s32[36], index: 0, kind: input, shape index: {}]   ;;  %s3594_s5 = inlined_call_operand.vmem [shape: f32[2,16,16,8], index: 5, kind: input, shape index: {}]   ;;  %s3595_s6 = inlined_call_operand.vmem [shape: f32[36,16,8], index: 6, kind: output, shape index: {}]   ;;  %s3596_s1 = inlined_call_operand.vmem [shape: s32[144], index: 1, kind: input, shape index: {}]   ;;  %s3597_s2 = inlined_call_operand.vmem [shape: s32[144], index: 2, kind: input, shape index: {}]   ;;  %s3598_s3 = inlined_call_operand.vmem [shape: s32[144], index: 3, kind: input, shape index: {}]   ;;  %s3599_s4 = inlined_call_operand.vmem [shape: s32[144], index: 4, kind: input, shape index: {}]  }
   0x1   :  { %s11_s23 = sshll.u32 %s3593_s0, 4  ;;  %s15_s26 = sshll.u32 %s3596_s1, 4  ;;  %s12_s23 = int_to_ptr.vmem [resolvable:$true] %s11_s23  ;;  %s16_s26 = int_to_ptr.vmem [resolvable:$true] %s15_s26 }
   0x2   :  { %s1518_s27 = scalar_lea.vmem %s12_s23, 16  ;;  %p1523_p1 = scmp.lt.s32.totalorder %s12_s23, %s12_s23 }
   0x3   :  { %p1519_p0 = scmp.ne.s32.totalorder %s12_s23, %s1518_s27  ;;  %p1524_p2 = scmp.lt.s32.totalorder %s1518_s27, %s1518_s27 }
   0x5   :  { %p1525_p3 = por %p1524_p2, %p1523_p1 }
   0x7   :  { %p1526_p4 = pnand %p1525_p3, %p1519_p0 }
   0x9   :  { %1529 = shalt.err (!%p1526_p4)  }
   0xa   :  { %s1588_s28 = smov [#allocation3]   ;;  %s1530_s29 = scalar_lea.vmem %s16_s26, 32 }
   0xb   :  { %14 = dma.vmem_to_smem %s12_s23, 16, %s1588_s28, [#allocation2] }
   0xc   :  { %p1531_p5 = scmp.ne.s32.totalorder %s16_s26, %s1530_s29  ;;  %p1535_p6 = scmp.lt.s32.totalorder %s16_s26, %s16_s26 }
   0xd   :  { %p1536_p7 = scmp.lt.s32.totalorder %s1530_s29, %s1530_s29 }
   0xf   :  { %p1537_p8 = por %p1536_p7, %p1535_p6 }
  0x11   :  { %p1538_p9 = pnand %p1537_p8, %p1531_p5 }
  0x13   :  { %1541 = shalt.err (!%p1538_p9)  }
  0x14   :  { %s1589_s0 = smov [#allocation4]   ;;  %s19_s7 = sshll.u32 %s3597_s2, 4  ;;  %s20_s7 = int_to_ptr.vmem [resolvable:$true] %s19_s7 }
  0x15   :  { %18 = dma.vmem_to_smem %s16_s26, 32, %s1589_s0, [#allocation2] }
  0x16   :  { %s23_s10 = sshll.u32 %s3598_s3, 4  ;;  %s1542_s11 = scalar_lea.vmem %s20_s7, 32  ;;  %s24_s10 = int_to_ptr.vmem [resolvable:$true] %s23_s10 }
  0x17   :  { %p1543_p10 = scmp.ne.s32.totalorder %s20_s7, %s1542_s11  ;;  %p1547_p11 = scmp.lt.s32.totalorder %s20_s7, %s20_s7 }
  0x18   :  { %p1548_p12 = scmp.lt.s32.totalorder %s1542_s11, %s1542_s11 }
  0x1a   :  { %p1549_p13 = por %p1548_p12, %p1547_p11 }
  0x1c   :  { %p1550_p0 = pnand %p1549_p13, %p1543_p10 }
  0x1e   :  { %1553 = shalt.err (!%p1550_p0)  }
  0x1f   :  { %s1590_s12 = smov [#allocation5]   ;;  %s1554_s13 = scalar_lea.vmem %s24_s10, 32 }
  0x20   :  { %22 = dma.vmem_to_smem %s20_s7, 32, %s1590_s12, [#allocation2] }
  0x21   :  { %p1555_p1 = scmp.ne.s32.totalorder %s24_s10, %s1554_s13  ;;  %p1559_p2 = scmp.lt.s32.totalorder %s24_s10, %s24_s10 }
  0x22   :  { %p1560_p3 = scmp.lt.s32.totalorder %s1554_s13, %s1554_s13 }
  0x24   :  { %p1561_p4 = por %p1560_p3, %p1559_p2 }
  0x26   :  { %p1562_p5 = pnand %p1561_p4, %p1555_p1 }
  0x28   :  { %1565 = shalt.err (!%p1562_p5)  }
  0x29   :  { %s1591_s2 = smov [#allocation6]   ;;  %s27_s15 = sshll.u32 %s3599_s4, 4  ;;  %s28_s15 = int_to_ptr.vmem [resolvable:$true] %s27_s15 }
  0x2a   :  { %26 = dma.vmem_to_smem %s24_s10, 32, %s1591_s2, [#allocation2] }
  0x2b   :  { %s1566_s16 = scalar_lea.vmem %s28_s15, 32  ;;  %p1571_p7 = scmp.lt.s32.totalorder %s28_s15, %s28_s15 }
  0x2c   :  { %p1567_p6 = scmp.ne.s32.totalorder %s28_s15, %s1566_s16  ;;  %p1572_p8 = scmp.lt.s32.totalorder %s1566_s16, %s1566_s16 }
  0x2e   :  { %p1573_p9 = por %p1572_p8, %p1571_p7 }
  0x30   :  { %p1574_p10 = pnand %p1573_p9, %p1567_p6 }
  0x32   :  { %1577 = shalt.err (!%p1574_p10)  }
  0x33   :  { %s1592_s17 = smov [#allocation7]  }
  0x34   :  { %30 = dma.vmem_to_smem %s28_s15, 32, %s1592_s17, [#allocation2] }
  0x35   :  { %1582 = dma.done.wait [#allocation2], 144 }
  0x36   :  { %1583 = vsyncadd [#allocation2], 4294967152 }
  0x37   :  { %32 = sfence }
  0x38   :  { %s1644_s18 = smov 0  }
  0x39 LB: > { %s1650_s4 = sadd.s32 4294967295, %s1586_s18   ;;  %p1462_p11 = scmp.ge.s32.totalorder %s1586_s18, 1  ;;  %s1586_s18 = sphi %s1644_s18, %s38_s18  }
  0x3a   : > { %p118_p12 = scmp.lt.s32.totalorder %s1586_s18, 37 }
  0x3c   : > { %p119_p13 = pnand %p1462_p11, %p118_p12 }
  0x3e   : > { %122 = sbr.rel (%p119_p13) target bundleno = 363 (0x16b), region = 24 }
  0x43   : > { %s1467_s19 = sshll.u32 %s1650_s4, 2  ;;  %s1656_s20 = sld [smem:[#allocation3 + %s1650_s4]]  ;;  %v183_v0 = vlaneseq  ;;  %v3722_v8 = vmov 0  ;;  %v3725_v9 = vmov 0  ;;  %v3730_v12 = vmov 0 }
  0x44   : > { %s1658_s21 = sld [smem:[#allocation6 + %s1467_s19]]  ;;  %s198_s23 = sadd.s32 1, %s1467_s19  ;;  %v3733_v13 = vmov 0  ;;  %v3738_v16 = vmov 0  ;;  %v3741_v17 = vmov 0  ;;  %v3748_v21 = vmov 0 }
  0x45   : > { %s1660_s22 = sld [smem:[#allocation7 + %s1467_s19]]  ;;  %s210_s27 = sadd.s32 2, %s1467_s19  ;;  %v1676_v1 = vshrl.u32 %v183_v0, 7  ;;  %v3751_v22 = vmov 0  ;;  %v3601_v34 = vmov 0   ;;  %v3793_v38 = vmov 0 }
  0x46   : > { %s1662_s24 = sld [smem:[#allocation6 + %s198_s23]]  ;;  %s222_s1 = sadd.s32 3, %s1467_s19  ;;  %v3799_v37 = vmov 0  ;;  %v3803_v33 = vmov 0 }
  0x47   : > { %s1664_s25 = sld [smem:[#allocation7 + %s198_s23]]  ;;  %v1685_v2 = vadd.s32 8, %v1676_v1  ;;  %v1699_v5 = vsub.s32 0, %v1676_v1  ;;  %v1705_v7 = vsub.s32 1, %v1676_v1  ;;  %v1788_v23 = vsub.s32 2, %v1676_v1  ;;  %p146_p10 = scmp.lt.s32.totalorder %s1650_s4, 35 }
  0x48   : > { %s1666_s26 = sld [smem:[#allocation4 + %s1467_s19]]  ;;  %v1791_v24 = vsub.s32 3, %v1676_v1  ;;  %v1794_v25 = vsub.s32 4, %v1676_v1  ;;  %v1797_v26 = vsub.s32 5, %v1676_v1  ;;  %v1809_v29 = vsub.s32 6, %v1676_v1 }
  0x49   : > { %s1668_s28 = sld [smem:[#allocation5 + %s1467_s19]]  ;;  %p140_p2 = scmp.lt.s32.totalorder %s1656_s20, 1  ;;  %3754 = vst [vmem:[#allocation17_spill] sm:$0xff] %v1788_v23  ;;  %v1812_v30 = vsub.s32 7, %v1676_v1 }
  0x4a   : > { %s1670_s29 = sld [smem:[#allocation6 + %s210_s27]]  ;;  %3755 = vst [vmem:[#allocation18_spill] sm:$0xff] %v1791_v24  ;;  %3756 = vst [vmem:[#allocation19_spill] sm:$0xff] %v1794_v25  ;;  %s4334_s4 = smov (!%p146_p10, %s1650_s4), 35 }
  0x4b   : > { %s1672_s0 = sld [smem:[#allocation7 + %s210_s27]]  ;;  %p197_p0 = scmp.le.s32.totalorder %s1660_s22, %s1658_s21  ;;  %3757 = vst [vmem:[#allocation20_spill] sm:$0xff] %v1797_v26  ;;  %3758 = vst [vmem:[#allocation21_spill] sm:$0xff] %v1809_v29 }
  0x4c   : > { %s1674_s30 = sld [smem:[#allocation4 + %s210_s27]]  ;;  %s4332_s20 = smov (!%p140_p2, %s1656_s20), 1  ;;  %3759 = vst [vmem:[#allocation22_spill] sm:$0xff] %v1812_v30  ;;  %v3880_v15 = vstv %s1662_s24 }
  0x4d   : > { %s1678_s7 = sld [smem:[#allocation5 + %s210_s27]]  ;;  %s1470_s14 = sshll.u32 %s4332_s20, 8 }
  0x4e   : > { %s1682_s8 = sld [smem:[#allocation4 + %s222_s1]]  ;;  %v237_v3 = vstv %s1666_s26  ;;  %s1829_s17 = scalar_lea.vmem %s3594_s5, %s1470_s14 }
  0x4f   : > { %p236_p1 = scmp.le.s32.totalorder %s1668_s28, %s1666_s26  ;;  %s1689_s9 = sld [smem:[#allocation5 + %s222_s1]]  ;;  %v240_v4 = vstv %s1668_s28  ;;  %vm1736_vm2 = vcmp.ge.s32.totalorder %v1676_v1, %v237_v3  ;;  %vm1768_vm8 = vcmp.ge.s32.totalorder %v1685_v2, %v237_v3  ;;  %v1853_v52 = vld [vmem:[%s1829_s17] sm:$0xff]  ;;  %v1864_v57 = vld [vmem:[%s1829_s17 + $0x8] sm:$0xff]  ;;  %v1867_v58 = vld [vmem:[%s1829_s17 + $0x10] sm:$0xff] }
  0x50   : > { %s1692_s10 = sld [smem:[#allocation6 + %s222_s1]]  ;;  %vm1752_vm5 = vcmp.lt.s32.totalorder %v1676_v1, %v240_v4  ;;  %vm1773_vm9 = vcmp.lt.s32.totalorder %v1685_v2, %v240_v4  ;;  %3761 = vst [vmem:[#allocation24_spill] sm:$0xff] %v1853_v52  ;;  %3762 = vst [vmem:[#allocation25_spill] sm:$0xff] %v1867_v58  ;;  %v1870_v59 = vld [vmem:[%s1829_s17 + $0x18] sm:$0xff]  ;;  %v1873_v60 = vld [vmem:[%s1829_s17 + $0x20] sm:$0xff]  ;;  %p209_p4 = scmp.le.s32.totalorder %s1664_s25, %s1662_s24 }
  0x51   : > { %s1694_s11 = sld [smem:[#allocation7 + %s222_s1]]  ;;  %p1713_p3 = por %p236_p1, %p197_p0  ;;  %vm243_vm12 = vmand %vm1736_vm2, %vm1752_vm5  ;;  %3763 = vst [vmem:[#allocation26_spill] sm:$0xff] %v1873_v60  ;;  %v1887_v3 = vld [vmem:[%s1829_s17 + $0x28] sm:$0xff]  ;;  %v1890_v4 = vld [vmem:[%s1829_s17 + $0x30] sm:$0xff] }
  0x52   : > { %s1701_s12 = sld [smem:[#allocation4 + %s198_s23]]  ;;  %v832_v6 = vstv %s1674_s30  ;;  %vm244_vm13 = vmand %vm1768_vm8, %vm1773_vm9  ;;  %v245_v35 = vsel %vm243_vm12, 1, %v3601_v34  ;;  %3766 = vst [vmem:[#allocation27_spill] sm:$0xff] %v1890_v4  ;;  %v1915_v19 = vld [vmem:[%s1829_s17 + $0x48] sm:$0xff]  ;;  %v1918_v20 = vld [vmem:[%s1829_s17 + $0x50] sm:$0xff]  ;;  %p221_p5 = scmp.le.s32.totalorder %s1672_s0, %s1670_s29 }
  0x53   : > { %s1717_s2 = sld [smem:[#allocation5 + %s198_s23]]  ;;  %vm1720_vm0 = vcmp.ge.s32.totalorder %v1676_v1, %v832_v6  ;;  %vm1725_vm1 = vcmp.ge.s32.totalorder %v1685_v2, %v832_v6  ;;  %v835_v10 = vstv %s1678_s7  ;;  %v246_v39 = vsel %vm244_vm13, 1, %v3601_v34  ;;  %v1893_v6 = vld [vmem:[%s1829_s17 + $0x38] sm:$0xff]  ;;  %3777 = vst [vmem:[#allocation30_spill] sm:$0xff] %v1915_v19  ;;  %3778 = vst [vmem:[#allocation31_spill] sm:$0xff] %v1918_v20  ;;  %v1971_v36 = vld [vmem:[%s1829_s17 + $0x88] sm:$0xff]  ;;  %p2258_p7 = por %p236_p1, %p209_p4 }
  0x54   : > { %v3723_v8 = vsel %vm1720_vm0, 4294967295, %v3722_v8  ;;  %v3726_v9 = vsel %vm1725_vm1, 4294967295, %v3725_v9  ;;  %vm1741_vm3 = vcmp.lt.s32.totalorder %v1676_v1, %v835_v10  ;;  %vm1746_vm4 = vcmp.lt.s32.totalorder %v1685_v2, %v835_v10  ;;  %s470_s3 = scalar_select %p1713_p3, 1, 0  ;;  %3767 = vst [vmem:[#allocation28_spill] sm:$0xff] %v1893_v6  ;;  %v1896_v10 = vld [vmem:[%s1829_s17 + $0x40] sm:$0xff] }
  0x55   : > { %3724 = vst [vmem:[#allocation9_spill] sm:$0xff] %v3723_v8  ;;  %3727 = vst [vmem:[#allocation10_spill] sm:$0xff] %v3726_v9  ;;  %v3731_v12 = vsel %vm1741_vm3, 4294967295, %v3730_v12  ;;  %v3734_v13 = vsel %vm1746_vm4, 4294967295, %v3733_v13  ;;  %v1119_v14 = vstv %s1682_s8  ;;  %v1122_v18 = vstv %s1689_s9  ;;  %v1949_v34 = vld [vmem:[%s1829_s17 + $0x78] sm:$0xff]  ;;  %v2010_v27 = vld [vmem:[%s1829_s17 + $0xa8] sm:$0xff]  ;;  %p2287_p8 = por %p236_p1, %p221_p5  ;;  %p831_p3 = scmp.le.s32.totalorder %s1678_s7, %s1674_s30 }
  0x56   : > { %3732 = vst [vmem:[#allocation11_spill] sm:$0xff] %v3731_v12  ;;  %3735 = vst [vmem:[#allocation12_spill] sm:$0xff] %v3734_v13  ;;  %vm1757_vm6 = vcmp.ge.s32.totalorder %v1676_v1, %v1119_v14  ;;  %vm1762_vm7 = vcmp.ge.s32.totalorder %v1685_v2, %v1119_v14  ;;  %vm1778_vm10 = vcmp.lt.s32.totalorder %v1676_v1, %v1122_v18  ;;  %v1832_v41 = vstv %s470_s3  ;;  %v1992_v32 = vld [vmem:[%s1829_s17 + $0x98] sm:$0xff]  ;;  %v2013_v43 = vld [vmem:[%s1829_s17 + $0xb0] sm:$0xff]  ;;  %s490_s26 = scalar_select %p2258_p7, 1, 0 }
  0x57   : > { %v3739_v16 = vsel %vm1757_vm6, 4294967295, %v3738_v16  ;;  %v3742_v17 = vsel %vm1762_vm7, 4294967295, %v3741_v17  ;;  %v3749_v21 = vsel %vm1778_vm10, 4294967295, %v3748_v21  ;;  %vm1783_vm11 = vcmp.lt.s32.totalorder %v1685_v2, %v1122_v18  ;;  %3760 = vst [vmem:[#allocation23_spill] sm:$0xff] %v1832_v41  ;;  %3768 = vst [vmem:[#allocation29_spill] sm:$0xff] %v1896_v10  ;;  %v2046_v9 = vld [vmem:[%s1829_s17 + $0xc8] sm:$0xff]  ;;  %p233_p6 = scmp.le.s32.totalorder %s1694_s11, %s1692_s10  ;;  %p3102_p7 = por %p831_p3, %p197_p0 }
  0x58   : > { %3740 = vst [vmem:[#allocation13_spill] sm:$0xff] %v3739_v16  ;;  %3743 = vst [vmem:[#allocation14_spill] sm:$0xff] %v3742_v17  ;;  %v3752_v22 = vsel %vm1783_vm11, 4294967295, %v3751_v22  ;;  %v250_v40 = vrot.slane %v245_v35, %v1699_v5  ;;  %v254_v44 = vrot.slane %v245_v35, %v1705_v7  ;;  %v258_v45 = vrot.slane %v245_v35, %v1788_v23  ;;  %v2028_v17 = vld [vmem:[%s1829_s17 + $0xb8] sm:$0xff]  ;;  %s510_s27 = scalar_select %p2287_p8, 1, 0 }
  0x59   : > { %3750 = vst [vmem:[#allocation15_spill] sm:$0xff] %v3749_v21  ;;  %3753 = vst [vmem:[#allocation16_spill] sm:$0xff] %v3752_v22  ;;  %v262_v46 = vrot.slane %v245_v35, %v1791_v24  ;;  %v266_v47 = vrot.slane %v245_v35, %v1794_v25  ;;  %v270_v48 = vrot.slane %v245_v35, %v1797_v26  ;;  %v2031_v21 = vld [vmem:[%s1829_s17 + $0xc0] sm:$0xff]  ;;  %v3881_v18 = vmov 0  ;;  %p2322_p9 = por %p236_p1, %p233_p6  ;;  %s1471_s1 = sshll.u32 %s4334_s4, 4 }
  0x5a   : > { %v274_v49 = vrot.slane %v245_v35, %v1809_v29  ;;  %v278_v50 = vrot.slane %v245_v35, %v1812_v30  ;;  %v282_v51 = vrot.slane %v246_v39, %v1699_v5  ;;  %v286_v53 = vrot.slane %v246_v39, %v1705_v7  ;;  %v1921_v35 = vld [vmem:[%s1829_s17 + $0x58] sm:$0xff]  ;;  %3791 = vst [vmem:[#allocation36_spill] sm:$0xff] %v1949_v34  ;;  %s2651_s3 = scalar_lea.vmem %s3595_s6, %s1471_s1  ;;  %p544_p11 = scmp.le.s32.totalorder %s1717_s2, %s1701_s12 }
  0x5b   : > { %v290_v54 = vrot.slane %v246_v39, %v1788_v23  ;;  %v294_v55 = vrot.slane %v246_v39, %v1791_v24  ;;  %v298_v56 = vrot.slane %v246_v39, %v1794_v25  ;;  %v302_v61 = vrot.slane %v246_v39, %v1797_v26  ;;  %3779 = vst [vmem:[#allocation32_spill] sm:$0xff] %v1921_v35  ;;  %s530_s28 = scalar_select %p2322_p9, 1, 0 }
  0x5c   : > { %v306_v62 = vrot.slane %v246_v39, %v1809_v29  ;;  %v310_v63 = vrot.slane %v246_v39, %v1812_v30  ;;  %vm1878_vm5 = vcmp.ne.s32.totalorder %v250_v40, 0  ;;  %vm1898_vm12 = vcmp.ne.s32.totalorder %v254_v44, 0  ;;  %v1924_v39 = vld [vmem:[%s1829_s17 + $0x60] sm:$0xff]  ;;  %3801 = vst [vmem:[#allocation38_spill] sm:$0xff] %v1971_v36  ;;  %3809 = vst [vmem:[#allocation40_spill] sm:$0xff] %v1992_v32  ;;  %p2759_p12 = por %p544_p11, %p197_p0  ;;  %p2773_p13 = por %p544_p11, %p209_p4 }
  0x5d   : > { %vm1902_vm13 = vcmp.ne.s32.totalorder %v258_v45, 0  ;;  %vm1906_vm9 = vcmp.ne.s32.totalorder %v262_v46, 0  ;;  %vm1910_vm2 = vcmp.ne.s32.totalorder %v266_v47, 0  ;;  %3780 = vst [vmem:[#allocation33_spill] sm:$0xff] %v1924_v39  ;;  %vm1926_vm15 = vcmp.ne.s32.totalorder %v270_v48, 0  ;;  %v1943_v47 = vld [vmem:[%s1829_s17 + $0x68] sm:$0xff]  ;;  %p2783_p1 = por %p544_p11, %p221_p5  ;;  %p2801_p2 = por %p544_p11, %p233_p6 }
  0x5e   : > { %vm1930_vm14 = vcmp.ne.s32.totalorder %v274_v49, 0  ;;  %vm1934_vm8 = vcmp.ne.s32.totalorder %v278_v50, 0  ;;  %v3785_v45 = vmov 0  ;;  %vm1938_vm11 = vcmp.ne.s32.totalorder %v282_v51, 0  ;;  %3789 = vst [vmem:[#allocation34_spill] sm:$0xff] %v1943_v47  ;;  %v1946_v48 = vld [vmem:[%s1829_s17 + $0x70] sm:$0xff]  ;;  %p3116_p8 = por %p831_p3, %p209_p4  ;;  %p3126_p9 = por %p831_p3, %p221_p5 }
  0x5f   : > { %v3786_v45 = vsel %vm1934_vm8, 4294967295, %v3785_v45  ;;  %v3787_v46 = vmov 0  ;;  %3790 = vst [vmem:[#allocation35_spill] sm:$0xff] %v1946_v48  ;;  %v1952_v49 = vld [vmem:[%s1829_s17 + $0x80] sm:$0xff]  ;;  %vm1954_vm7 = vcmp.ne.s32.totalorder %v286_v53, 0  ;;  %vm1958_vm10 = vcmp.ne.s32.totalorder %v290_v54, 0  ;;  %p3144_p10 = por %p831_p3, %p233_p6  ;;  %p1118_p11 = scmp.le.s32.totalorder %s1689_s9, %s1682_s8 }
  0x60   : > { %v3788_v46 = vsel %vm1938_vm11, 4294967295, %v3787_v46  ;;  %3792 = vst [vmem:[#allocation37_spill] sm:$0xff] %v1952_v49  ;;  %v3794_v38 = vsel %vm1954_vm7, 4294967295, %v3793_v38  ;;  %v3795_v50 = vmov 0  ;;  %vm1962_vm6 = vcmp.ne.s32.totalorder %v294_v55, 0  ;;  %v1974_v53 = vld [vmem:[%s1829_s17 + $0x90] sm:$0xff] }
  0x61   : > { %v3796_v50 = vsel %vm1958_vm10, 4294967295, %v3795_v50  ;;  %v3797_v51 = vmov 0  ;;  %vm1966_vm4 = vcmp.ne.s32.totalorder %v298_v56, 0  ;;  %3802 = vst [vmem:[#allocation39_spill] sm:$0xff] %v1974_v53  ;;  %vm1976_vm1 = vcmp.ne.s32.totalorder %v302_v61, 0  ;;  %v1995_v61 = vld [vmem:[%s1829_s17 + $0xa0] sm:$0xff] }
  0x62   : > { %v3798_v51 = vsel %vm1962_vm6, 4294967295, %v3797_v51  ;;  %v3800_v37 = vsel %vm1966_vm4, 4294967295, %v3799_v37  ;;  %v3804_v33 = vsel %vm1976_vm1, 4294967295, %v3803_v33  ;;  %vm1980_vm3 = vcmp.ne.s32.totalorder %v306_v62, 0  ;;  %3810 = vst [vmem:[#allocation41_spill] sm:$0xff] %v1995_v61  ;;  %3811 = vst [vmem:[#allocation42_spill] sm:$0xff] %v2010_v27 }
  0x63   : > { %vm1984_vm0 = vcmp.ne.s32.totalorder %v310_v63, 0  ;;  %v3807_v55 = vmov 0  ;;  %v359_v56 = vsel %vm1878_vm5, %v1853_v52, -inf  ;;  %v361_v63 = vsel %vm1898_vm12, %v1867_v58, -inf  ;;  %3812 = vst [vmem:[#allocation43_spill] sm:$0xff] %v2013_v43  ;;  %3813 = vst [vmem:[#allocation44_spill] sm:$0xff] %v2028_v17 }
  0x64   : > { %v3808_v55 = vsel %vm1984_vm0, 4294967295, %v3807_v55  ;;  %v363_v28 = vsel %vm1902_vm13, %v1873_v60, -inf  ;;  %v365_v42 = vsel %vm1906_vm9, %v1890_v4, -inf  ;;  %v367_v22 = vsel %vm1910_vm2, %v1896_v10, -inf  ;;  %3814 = vst [vmem:[#allocation45_spill] sm:$0xff] %v2031_v21  ;;  %v2091_v10 = vld [vmem:[%s1829_s17 + $0xe0] sm:$0xff] }
  0x65   : > { %v369_v16 = vsel %vm1926_vm15, %v1918_v20, -inf  ;;  %v371_v13 = vsel %vm1930_vm14, %v1924_v39, -inf  ;;  %v373_v12 = vsel %vm1934_vm8, %v1946_v48, -inf  ;;  %v375_v8 = vsel %vm1938_vm11, %v1952_v49, -inf  ;;  %v2073_v49 = vld [vmem:[%s1829_s17 + $0xd0] sm:$0xff]  ;;  %v2076_v20 = vld [vmem:[%s1829_s17 + $0xd8] sm:$0xff] }
  0x66   : > { %v377_v62 = vsel %vm1954_vm7, %v1974_v53, -inf  ;;  %v379_v31 = vsel %vm1958_vm10, %v1995_v61, -inf  ;;  %3815 = vst [vmem:[#allocation46_spill] sm:$0xff] %v2073_v49  ;;  %3816 = vst [vmem:[#allocation47_spill] sm:$0xff] %v2076_v20  ;;  %v381_v53 = vsel %vm1962_vm6, %v2013_v43, -inf  ;;  %v383_v61 = vsel %vm1966_vm4, %v2031_v21, -inf }
  0x67   : > { %3817 = vst [vmem:[#allocation48_spill] sm:$0xff] %v2091_v10  ;;  %v2094_v4 = vld [vmem:[%s1829_s17 + $0xf0] sm:$0xff]  ;;  %vm3819_vm10 = vcmask 64512   ;;  %v3822_v58 = vstv %s1701_s12  ;;  %v3823_v21 = vmov 0  ;;  %v3825_v52 = vstv %s1717_s2  ;;  %s773_s20 = scalar_select %p2759_p12, 1, 0 }
  0x68   : > { %3818 = vst [vmem:[#allocation49_spill] sm:$0xff] %v2094_v4  ;;  %v392_v43 = vsel %vm3819_vm10, %v359_v56, -inf  ;;  %vm3820_vm7 = vmmov %vm3819_vm10  ;;  %vm2105_vm11 = vcmp.ge.s32.totalorder %v1676_v1, %v3822_v58  ;;  %vm2112_vm8 = vcmp.lt.s32.totalorder %v1676_v1, %v3825_v52  ;;  %v3828_v39 = vstv %s1658_s21  ;;  %s821_s23 = scalar_select %p2801_p2, 1, 0 }
  0x69   : > { %v393_v48 = vsel %vm3820_vm7, %v361_v63, -inf  ;;  %vm3821_vm6 = vmmov %vm3820_vm7  ;;  %v3824_v21 = vsel %vm2105_vm11, 4294967295, %v3823_v21  ;;  %vm2119_vm10 = vcmp.ge.s32.totalorder %v1676_v1, %v3828_v39  ;;  %v3829_v56 = vmov 0  ;;  %s1060_s4 = scalar_select %p3102_p7, 1, 0 }
  0x6a   : > { %v394_v60 = vsel %vm3821_vm6, %v363_v28, -inf  ;;  %v3830_v56 = vsel %vm2119_vm10, 4294967295, %v3829_v56  ;;  %v3831_v28 = vstv %s1660_s22  ;;  %v3832_v63 = vmov 0  ;;  %vm3834_vm4 = vmmov %vm3820_vm7  ;;  %s1076_s30 = scalar_select %p3116_p8, 1, 0 }
  0x6b   : > { %vm2126_vm6 = vcmp.lt.s32.totalorder %v1676_v1, %v3831_v28  ;;  %v395_v58 = vmax.f32 %v392_v43, %v394_v60  ;;  %v396_v30 = vsel %vm3820_vm7, %v365_v42, -inf  ;;  %v398_v52 = vsel %vm3834_vm4, %v367_v22, -inf  ;;  %vm3835_vm11 = vmmov %vm3834_vm4  ;;  %s1092_s7 = scalar_select %p3126_p9, 1, 0 }
  0x6c   : > { %v3833_v63 = vsel %vm2126_vm6, 4294967295, %v3832_v63  ;;  %v400_v29 = vsel %vm3835_vm11, %v369_v16, -inf  ;;  %v3836_v39 = vstv %s1662_s24  ;;  %v3839_v28 = vstv %s1664_s25  ;;  %vm3842_vm11 = vmmov %vm3834_vm4  ;;  %s1108_s13 = scalar_select %p3144_p10, 1, 0 }
  0x6d   : > { %vm2136_vm10 = vcmp.ge.s32.totalorder %v1676_v1, %v3836_v39  ;;  %vm2143_vm6 = vcmp.lt.s32.totalorder %v1676_v1, %v3839_v28  ;;  %v385_v16 = vsel %vm1976_vm1, %v2073_v49, -inf  ;;  %v397_v42 = vmax.f32 %v393_v48, %v396_v30  ;;  %p3527_p12 = por %p1118_p11, %p197_p0  ;;  %p3557_p0 = por %p1118_p11, %p221_p5 }
  0x6e   : > { %v402_v60 = vsel %vm3834_vm4, %v371_v13, -inf  ;;  %v387_v39 = vsel %vm1980_vm3, %v2091_v10, -inf  ;;  %v389_v28 = vsel %vm1984_vm0, %v2094_v4, -inf  ;;  %v399_v25 = vmax.f32 %v395_v58, %v398_v52 }
  0x6f   : > { %v404_v49 = vsel %vm3842_vm11, %v373_v12, -inf  ;;  %v3843_v24 = vstv %s1701_s12  ;;  %v3844_v30 = vmov 0  ;;  %v3846_v13 = vstv %s1717_s2  ;;  %s789_s12 = scalar_select %p2773_p13, 1, 0 }
  0x70   : > { %vm2168_vm7 = vcmp.ge.s32.totalorder %v1685_v2, %v3843_v24  ;;  %vm2175_vm4 = vcmp.lt.s32.totalorder %v1685_v2, %v3846_v13  ;;  %v3847_v48 = vmov 0  ;;  %v3849_v22 = vstv %s1670_s29  ;;  %s805_s2 = scalar_select %p2783_p1, 1, 0 }
  0x71   : > { %v3845_v30 = vsel %vm2168_vm7, 4294967295, %v3844_v30  ;;  %v3848_v48 = vsel %vm2175_vm4, 4294967295, %v3847_v48  ;;  %vm2182_vm1 = vcmp.ge.s32.totalorder %v1676_v1, %v3849_v22  ;;  %v3850_v58 = vmov 0  ;;  %p3539_p13 = por %p1118_p11, %p209_p4  ;;  %p3573_p4 = por %p1118_p11, %p233_p6 }
  0x72   : > { %v3851_v58 = vsel %vm2182_vm1, 4294967295, %v3850_v58  ;;  %v3852_v12 = vstv %s1672_s0  ;;  %v3853_v24 = vmov 0  ;;  %v401_v52 = vmax.f32 %v397_v42, %v400_v29  ;;  %s1347_s24 = scalar_select %p3527_p12, 1, 0 }
  0x73   : > { %vm2189_vm11 = vcmp.lt.s32.totalorder %v1676_v1, %v3852_v12  ;;  %vm3855_vm7 = vcmask 64512   ;;  %v3858_v10 = vstv %s1692_s10  ;;  %v3861_v23 = vstv %s1694_s11 }
  0x74   : > { %v3854_v24 = vsel %vm2189_vm11, 4294967295, %v3853_v24  ;;  %v406_v13 = vsel %vm3855_vm7, %v375_v8, -inf  ;;  %vm3856_vm4 = vmmov %vm3855_vm7  ;;  %vm2201_vm1 = vcmp.ge.s32.totalorder %v1676_v1, %v3858_v10  ;;  %vm2208_vm11 = vcmp.lt.s32.totalorder %v1676_v1, %v3861_v23 }
  0x75   : > { %v408_v22 = vsel %vm3856_vm4, %v377_v62, -inf  ;;  %vm3857_vm0 = vmmov %vm3856_vm4  ;;  %v403_v42 = vmax.f32 %v399_v25, %v402_v60  ;;  %v3865_v62 = vsel %vm1878_vm5, %v1864_v57, -inf  ;;  %v3866_v1 = vsel %vm1898_vm12, %v1870_v59, -inf }
  0x76   : > { %v410_v4 = vsel %vm3857_vm0, %v379_v31, -inf  ;;  %vm3864_vm7 = vmmov %vm3857_vm0  ;;  %v423_v31 = vsel %vm3857_vm0, %v3865_v62, -inf  ;;  %v3868_v25 = vstv %s1658_s21  ;;  %v3871_v10 = vstv %s1660_s22 }
  0x77   : > { %v412_v8 = vsel %vm3864_vm7, %v381_v53, -inf  ;;  %vm3867_vm4 = vmmov %vm3857_vm0  ;;  %vm2226_vm7 = vcmp.ge.s32.totalorder %v1685_v2, %v3868_v25  ;;  %vm2233_vm5 = vcmp.lt.s32.totalorder %v1685_v2, %v3871_v10  ;;  %v405_v60 = vmax.f32 %v401_v52, %v404_v49 }
  0x78   : > { %v424_v23 = vsel %vm3867_vm4, %v3866_v1, -inf  ;;  %v3874_v11 = vsel %vm1902_vm13, %v1887_v3, -inf  ;;  %vm3875_vm12 = vmmov %vm3857_vm0  ;;  %v3876_v1 = vsel %vm1906_vm9, %v1893_v6, -inf  ;;  %v3877_v10 = vsel %vm1910_vm2, %v1915_v19, -inf }
  0x79   : > { %v425_v62 = vsel %vm3875_vm12, %v3874_v11, -inf  ;;  %v427_v25 = vsel %vm3857_vm0, %v3876_v1, -inf  ;;  %vm3878_vm4 = vmmov %vm3857_vm0  ;;  %vm2265_vm9 = vcmp.ge.s32.totalorder %v1685_v2, %v3880_v15  ;;  %v3883_v49 = vstv %s1664_s25  ;;  %s1363_s25 = scalar_select %p3539_p13, 1, 0 }
  0x7a   : > { %v429_v14 = vsel %vm3878_vm4, %v3877_v10, -inf  ;;  %v3882_v18 = vsel %vm2265_vm9, 4294967295, %v3881_v18  ;;  %vm2272_vm2 = vcmp.lt.s32.totalorder %v1685_v2, %v3883_v49  ;;  %v3884_v52 = vmov 0  ;;  %vm3887_vm13 = vmmov %vm3857_vm0 }
  0x7b   : > { %v3885_v52 = vsel %vm2272_vm2, 4294967295, %v3884_v52  ;;  %v407_v11 = vmax.f32 %v403_v42, %v406_v13  ;;  %v426_v1 = vmax.f32 %v423_v31, %v425_v62  ;;  %v428_v10 = vmax.f32 %v424_v23, %v427_v25 }
  0x7c   : > { %v3886_v19 = vsel %vm1926_vm15, %v1921_v35, -inf  ;;  %v3889_v15 = vstv %s1670_s29  ;;  %v3890_v49 = vmov 0  ;;  %v3892_v13 = vstv %s1672_s0  ;;  %vm3895_vm15 = vmmov %vm3878_vm4  ;;  %s1379_s29 = scalar_select %p3557_p0, 1, 0 }
  0x7d   : > { %v431_v6 = vsel %vm3887_vm13, %v3886_v19, -inf  ;;  %vm2294_vm12 = vcmp.ge.s32.totalorder %v1685_v2, %v3889_v15  ;;  %vm2301_vm0 = vcmp.lt.s32.totalorder %v1685_v2, %v3892_v13  ;;  %v3893_v40 = vmov 0  ;;  %s1395_s0 = scalar_select %p3573_p4, 1, 0 }
  0x7e   : > { %v3891_v49 = vsel %vm2294_vm12, 4294967295, %v3890_v49  ;;  %v3894_v40 = vsel %vm2301_vm0, 4294967295, %v3893_v40  ;;  %v409_v19 = vmax.f32 %v405_v60, %v408_v22  ;;  %v414_v42 = vsel %vm3895_vm15, %v383_v61, -inf  ;;  %vm3899_vm12 = vmmov %vm3878_vm4  ;;  %v2327_v61 = vld [vmem:[%s1829_s17 + $0xe8] sm:$0xff] }
  0x7f   : > { %v3896_v31 = vsel %vm1930_vm14, %v1943_v47, -inf  ;;  %vm3897_vm13 = vnez %v3786_v45  ;;  %v3901_v44 = vstv %s1692_s10  ;;  %v3902_v22 = vmov 0 }
  0x80   : > { %v433_v23 = vsel %vm3878_vm4, %v3896_v31, -inf  ;;  %v3898_v62 = vsel %vm3897_vm13, %v1949_v34, -inf  ;;  %vm2332_vm14 = vcmp.ge.s32.totalorder %v1685_v2, %v3901_v44  ;;  %v3904_v60 = vstv %s1694_s11  ;;  %v2345_v34 = vld [vmem:[%s1829_s17 + $0xf8] sm:$0xff] }
  0x81   : > { %v435_v25 = vsel %vm3899_vm12, %v3898_v62, -inf  ;;  %v3903_v22 = vsel %vm2332_vm14, 4294967295, %v3902_v22  ;;  %vm2339_vm15 = vcmp.lt.s32.totalorder %v1685_v2, %v3904_v60  ;;  %v3905_v45 = vmov 0  ;;  %vm3907_vm12 = vmmov %vm3878_vm4 }
  0x82   : > { %v3906_v45 = vsel %vm2339_vm15, 4294967295, %v3905_v45  ;;  %v411_v15 = vmax.f32 %v407_v11, %v410_v4  ;;  %v416_v13 = vsel %vm3907_vm12, %v385_v16, -inf  ;;  %v430_v31 = vmax.f32 %v426_v1, %v429_v14  ;;  %vm3910_vm14 = vmmov %vm3878_vm4 }
  0x83   : > { %v432_v62 = vmax.f32 %v428_v10, %v431_v6  ;;  %v413_v47 = vmax.f32 %v409_v19, %v412_v8  ;;  %v418_v44 = vsel %vm3878_vm4, %v387_v39, -inf  ;;  %vm3908_vm13 = vnez %v3788_v46  ;;  %vm3913_vm15 = vmmov %vm3878_vm4 }
  0x84   : > { %v3909_v35 = vsel %vm3908_vm13, %v1971_v36, -inf  ;;  %vm3911_vm0 = vnez %v3794_v38  ;;  %v415_v6 = vmax.f32 %v411_v15, %v414_v42  ;;  %vm3914_vm12 = vmmov %vm3878_vm4  ;;  %v434_v14 = vmax.f32 %v430_v31, %v433_v23 }
  0x85   : > { %v437_v2 = vsel %vm3910_vm14, %v3909_v35, -inf  ;;  %v3912_v4 = vsel %vm3911_vm0, %v1992_v32, -inf  ;;  %v420_v8 = vsel %vm3914_vm12, %v389_v28, -inf  ;;  %v436_v11 = vmax.f32 %v432_v62, %v435_v25  ;;  %vm3924_vm2 = vmmov %vm3914_vm12 }
  0x86   : > { %v439_v16 = vsel %vm3913_vm15, %v3912_v4, -inf  ;;  %vm3915_vm4 = vnez %v3824_v21  ;;  %vm3916_vm13 = vnez %v3833_v63  ;;  %vm3917_vm0 = vnez %v3830_v56 }
  0x87   : > { %vm2371_vm9 = vmand %vm3917_vm0, %vm3916_vm13  ;;  %v3918_v38 = vmov 0  ;;  %v388_v35 = vsel %vm1980_vm3, %v2327_v61, -inf  ;;  %v417_v46 = vmax.f32 %v413_v47, %v416_v13  ;;  %vm3920_vm15 = vnez %v3796_v50 }
  0x88   : > { %v3919_v38 = vsel %vm2371_vm9, 4294967295, %v3918_v38  ;;  %v3921_v39 = vsel %vm3920_vm15, %v2010_v27, -inf  ;;  %vm3922_vm14 = vnez %v3798_v51  ;;  %vm2394_vm3 = vmand %vm2136_vm10, %vm2143_vm6  ;;  %v3925_v47 = vmov 0 }
  0x89   : > { %v441_v28 = vsel %vm3914_vm12, %v3921_v39, -inf  ;;  %v3923_v63 = vsel %vm3922_vm14, %v2028_v17, -inf  ;;  %v3926_v47 = vsel %vm2394_vm3, 4294967295, %v3925_v47  ;;  %vm3927_vm13 = vnez %v3808_v55  ;;  %vm3930_vm14 = vmmov %vm3914_vm12 }
  0x8a   : > { %v443_v56 = vsel %vm3924_vm2, %v3923_v63, -inf  ;;  %v390_v50 = vsel %vm3927_vm13, %v2345_v34, -inf  ;;  %v419_v54 = vmax.f32 %v415_v6, %v418_v44  ;;  %v438_v51 = vmax.f32 %v434_v14, %v437_v2  ;;  %vm3933_vm10 = vmmov %vm3914_vm12  ;;  %v3952_v2 = vld [vmem:[#allocation17_spill] sm:$0xff] }
  0x8b   : > { %v440_v1 = vmax.f32 %v436_v11, %v439_v16  ;;  %v421_v10 = vmax.f32 %v417_v46, %v420_v8  ;;  %vm3928_vm2 = vnez %v3800_v37  ;;  %vm3931_vm0 = vnez %v3804_v33  ;;  %vm3937_vm13 = vmand %vm3915_vm4, %vm2112_vm8  ;;  %v3962_v11 = vld [vmem:[#allocation19_spill] sm:$0xff]  ;;  %v3963_v46 = vld [vmem:[#allocation20_spill] sm:$0xff] }
  0x8c   : > { %v3929_v19 = vsel %vm3928_vm2, %v2046_v9, -inf  ;;  %v3932_v26 = vsel %vm3931_vm0, %v2076_v20, -inf  ;;  %vm3934_vm6 = vnez %v3848_v48  ;;  %vm3935_vm15 = vnez %v3845_v30  ;;  %vm2439_vm8 = vmand %vm2201_vm1, %vm2208_vm11 }
  0x8d   : > { %v445_v43 = vsel %vm3930_vm14, %v3929_v19, -inf  ;;  %v447_v42 = vsel %vm3933_vm10, %v3932_v26, -inf  ;;  %vm552_vm12 = vmand %vm3935_vm15, %vm3934_vm6  ;;  %v3936_v55 = vmov 0   ;;  %vm3938_vm2 = vnez %v3854_v24 }
  0x8e   : > { %v2421_v37 = vsel %vm3937_vm13, 1, %v3936_v55  ;;  %vm3939_vm14 = vnez %v3851_v58  ;;  %v3940_v33 = vmov 0  ;;  %v442_v48 = vmax.f32 %v438_v51, %v441_v28  ;;  %vm3944_vm4 = vmmov %vm3933_vm10  ;;  %v3964_v28 = vld [vmem:[#allocation21_spill] sm:$0xff] }
  0x8f   : > { %vm2427_vm0 = vmand %vm3939_vm14, %vm3938_vm2  ;;  %v444_v23 = vmax.f32 %v440_v1, %v443_v56  ;;  %v2431_v30 = vstv %s490_s26  ;;  %v2433_v25 = vstv %s510_s27  ;;  %v3942_v21 = vmov 0 }
  0x90   : > { %v3941_v33 = vsel %vm2427_vm0, 4294967295, %v3940_v33  ;;  %v3943_v21 = vsel %vm2439_vm8, 4294967295, %v3942_v21  ;;  %v422_v41 = vmax.f32 %v419_v54, %v421_v10  ;;  %v449_v58 = vsel %vm3944_vm4, %v388_v35, -inf  ;;  %vm3945_vm10 = vmmov %vm3944_vm4 }
  0x91   : > { %v451_v24 = vsel %vm3945_vm10, %v390_v50, -inf  ;;  %v2445_v60 = vstv %s530_s28  ;;  %vm2451_vm6 = vmand %vm2226_vm7, %vm2233_vm5  ;;  %v3946_v15 = vmov 0  ;;  %v446_v12 = vmax.f32 %v442_v48, %v445_v43 }
  0x92   : > { %v3947_v15 = vsel %vm2451_vm6, 4294967295, %v3946_v15  ;;  %v448_v29 = vmax.f32 %v444_v23, %v447_v42  ;;  %v2456_v13 = vsel %vm552_vm12, 1, %v3936_v55  ;;  %v558_v31 = vrot.slane %v2421_v37, %v1699_v5  ;;  %vm3966_vm10 = vmmov %vm3944_vm4 }
  0x93   : > { %vm3948_vm1 = vnez %v3885_v52  ;;  %vm3949_vm11 = vnez %v3882_v18  ;;  %v3950_v53 = vmov 0  ;;  %v458_v0 = vsel %vm2371_vm9, %v422_v41, -inf }
  0x94   : > { %vm2464_vm15 = vmand %vm3949_vm11, %vm3948_vm1  ;;  %v478_v62 = vsel %vm2394_vm3, %v422_v41, -inf  ;;  %v562_v44 = vrot.slane %v2421_v37, %v1705_v7  ;;  %v566_v4 = vrot.slane %v2421_v37, %v3952_v2  ;;  %vm3953_vm7 = vnez %v3894_v40 }
  0x95   : > { %v3951_v53 = vsel %vm2464_vm15, 4294967295, %v3950_v53  ;;  %vm3954_vm5 = vnez %v3891_v49  ;;  %v3955_v18 = vmov 0  ;;  %v450_v52 = vmax.f32 %v446_v12, %v449_v58  ;;  %v3961_v49 = vld [vmem:[#allocation18_spill] sm:$0xff]  ;;  %vm3967_vm1 = vmmov %vm3944_vm4 }
  0x96   : > { %vm2480_vm12 = vmand %vm3954_vm5, %vm3953_vm7  ;;  %v452_v16 = vmax.f32 %v448_v29, %v451_v24  ;;  %v498_v6 = vsel %vm2427_vm0, %v422_v41, -inf  ;;  %v518_v8 = vsel %vm2439_vm8, %v422_v41, -inf  ;;  %vm3957_vm13 = vnez %v3906_v45  ;;  %v3965_v45 = vld [vmem:[#allocation22_spill] sm:$0xff] }
  0x97   : > { %v3956_v18 = vsel %vm2480_vm12, 4294967295, %v3955_v18  ;;  %vm3958_vm2 = vnez %v3903_v22  ;;  %v3959_v40 = vmov 0  ;;  %v570_v14 = vrot.slane %v2421_v37, %v3961_v49  ;;  %vm3968_vm11 = vmmov %vm3967_vm1 }
  0x98   : > { %vm2492_vm14 = vmand %vm3958_vm2, %vm3957_vm13  ;;  %v574_v35 = vrot.slane %v2421_v37, %v3962_v11  ;;  %v578_v39 = vrot.slane %v2421_v37, %v3963_v46  ;;  %v582_v63 = vrot.slane %v2421_v37, %v3964_v28  ;;  %v453_v56 = vmax.f32 %v450_v52, %v452_v16 }
  0x99   : > { %v3960_v40 = vsel %vm2492_vm14, 4294967295, %v3959_v40  ;;  %v586_v22 = vrot.slane %v2421_v37, %v3965_v45  ;;  %v590_v50 = vrot.slane %v2456_v13, %v1699_v5  ;;  %v594_v54 = vrot.slane %v2456_v13, %v1705_v7  ;;  %vm3969_vm7 = vmmov %vm3967_vm1 }
  0x9a   : > { %v460_v51 = vsel %vm3944_vm4, %v458_v0, -inf  ;;  %v480_v1 = vsel %vm3966_vm10, %v478_v62, -inf  ;;  %v500_v10 = vsel %vm3967_vm1, %v498_v6, -inf  ;;  %v520_v19 = vsel %vm3968_vm11, %v518_v8, -inf  ;;  %vm3970_vm5 = vmmov %vm3967_vm1 }
  0x9b   : > { %v459_v43 = vsel %vm2451_vm6, %v453_v56, -inf  ;;  %v479_v26 = vsel %vm2464_vm15, %v453_v56, -inf  ;;  %v499_v42 = vsel %vm2480_vm12, %v453_v56, -inf  ;;  %v519_v37 = vsel %vm2492_vm14, %v453_v56, -inf  ;;  %vm3971_vm13 = vmmov %vm3967_vm1 }
  0x9c   : > { %v461_v48 = vsel %vm3969_vm7, %v459_v43, -inf  ;;  %v481_v23 = vsel %vm3970_vm5, %v479_v26, -inf  ;;  %v501_v41 = vsel %vm3971_vm13, %v499_v42, -inf  ;;  %vm3972_vm2 = vmmov %vm3967_vm1  ;;  %v598_v62 = vrot.slane %v2456_v13, %v3952_v2 }
  0x9d   : > { %v521_v58 = vsel %vm3972_vm2, %v519_v37, -inf  ;;  %v462_v24 = vmax.f32 %v460_v51, %v461_v48  ;;  %v482_v12 = vmax.f32 %v480_v1, %v481_v23  ;;  %v502_v29 = vmax.f32 %v500_v10, %v501_v41  ;;  %v3973_v1 = vld [vmem:[#allocation23_spill] sm:$0xff] }
  0x9e   : > { %v522_v0 = vmax.f32 %v520_v19, %v521_v58  ;;  %v602_v52 = vrot.slane %v2456_v13, %v3961_v49  ;;  %v606_v16 = vrot.slane %v2456_v13, %v3962_v11  ;;  %v610_v6 = vrot.slane %v2456_v13, %v3963_v46 }
  0x9f   : > { %v463_v8 = vrot.slane %v462_v24, 4  ;;  %v483_v56 = vrot.slane %v482_v12, 4  ;;  %v503_v43 = vrot.slane %v502_v29, 4  ;;  %v614_v10 = vrot.slane %v2456_v13, %v3964_v28 }
  0xa0   : > { %v523_v51 = vrot.slane %v522_v0, 4  ;;  %v618_v19 = vrot.slane %v2456_v13, %v3965_v45  ;;  %vm2542_vm7 = vcmp.ne.s32.totalorder %v558_v31, 0  ;;  %v3974_v26 = vmov 0  ;;  %v4023_v31 = vld [vmem:[#allocation35_spill] sm:$0xff] }
  0xa1   : > { %v3975_v26 = vsel %vm2542_vm7, 4294967295, %v3974_v26  ;;  %vm2546_vm5 = vcmp.ne.s32.totalorder %v562_v44, 0  ;;  %v3976_v42 = vmov 0  ;;  %v464_v37 = vmax.f32 %v462_v24, %v463_v8 }
  0xa2   : > { %v3977_v42 = vsel %vm2546_vm5, 4294967295, %v3976_v42  ;;  %v484_v48 = vmax.f32 %v482_v12, %v483_v56  ;;  %v504_v23 = vmax.f32 %v502_v29, %v503_v43  ;;  %v524_v41 = vmax.f32 %v522_v0, %v523_v51  ;;  %v4000_v51 = vld [vmem:[#allocation24_spill] sm:$0xff] }
  0xa3   : > { %vm2551_vm11 = vcmp.ne.s32.totalorder %v566_v4, 0  ;;  %vm2555_vm1 = vcmp.ne.s32.totalorder %v570_v14, 0  ;;  %vm2559_vm10 = vcmp.ne.s32.totalorder %v574_v35, 0  ;;  %vm2563_vm4 = vcmp.ne.s32.totalorder %v578_v39, 0  ;;  %v4028_v4 = vld [vmem:[#allocation39_spill] sm:$0xff]  ;;  %v4029_v14 = vld [vmem:[#allocation41_spill] sm:$0xff] }
  0xa4   : > { %v465_v24 = vrot.slane %v464_v37, 2  ;;  %v485_v12 = vrot.slane %v484_v48, 2  ;;  %v505_v29 = vrot.slane %v504_v23, 2  ;;  %v525_v0 = vrot.slane %v524_v41, 2  ;;  %v4030_v35 = vld [vmem:[#allocation43_spill] sm:$0xff] }
  0xa5   : > { %vm2567_vm14 = vcmp.ne.s32.totalorder %v582_v63, 0  ;;  %vm2571_vm12 = vcmp.ne.s32.totalorder %v586_v22, 0  ;;  %vm2575_vm15 = vcmp.ne.s32.totalorder %v590_v50, 0  ;;  %vm2579_vm6 = vcmp.ne.s32.totalorder %v594_v54, 0 }
  0xa6   : > { %v466_v8 = vmax.f32 %v464_v37, %v465_v24  ;;  %v486_v63 = vmax.f32 %v484_v48, %v485_v12  ;;  %v506_v56 = vmax.f32 %v504_v23, %v505_v29  ;;  %v526_v43 = vmax.f32 %v524_v41, %v525_v0  ;;  %v4004_v0 = vld [vmem:[#allocation26_spill] sm:$0xff] }
  0xa7   : > { %vm2588_vm13 = vcmp.ne.s32.totalorder %v598_v62, 0  ;;  %vm2592_vm2 = vcmp.ne.s32.totalorder %v602_v52, 0  ;;  %vm2596_vm8 = vcmp.ne.s32.totalorder %v606_v16, 0  ;;  %v667_v37 = vsel %vm2542_vm7, %v4000_v51, -inf  ;;  %v4003_v16 = vld [vmem:[#allocation25_spill] sm:$0xff] }
  0xa8   : > { %v467_v48 = vrot.slane %v466_v8, 1  ;;  %v487_v24 = vrot.slane %v486_v63, 1  ;;  %v507_v23 = vrot.slane %v506_v56, 1  ;;  %v527_v41 = vrot.slane %v526_v43, 1 }
  0xa9   : > { %vm2603_vm0 = vcmp.ne.s32.totalorder %v610_v6, 0  ;;  %v669_v12 = vsel %vm2546_vm5, %v4003_v16, -inf  ;;  %v671_v51 = vsel %vm2551_vm11, %v4004_v0, -inf  ;;  %vm2620_vm3 = vcmp.ne.s32.totalorder %v614_v10, 0  ;;  %v4009_v16 = vld [vmem:[#allocation27_spill] sm:$0xff]  ;;  %v4011_v10 = vld [vmem:[#allocation29_spill] sm:$0xff] }
  0xaa   : > { %v468_v6 = vmax.f32 %v466_v8, %v467_v48  ;;  %v488_v45 = vmax.f32 %v486_v63, %v487_v24  ;;  %v508_v28 = vmax.f32 %v506_v56, %v507_v23  ;;  %v528_v46 = vmax.f32 %v526_v43, %v527_v41  ;;  %v4010_v8 = vld [vmem:[#allocation28_spill] sm:$0xff]  ;;  %v4017_v24 = vld [vmem:[#allocation30_spill] sm:$0xff] }
  0xab   : > { %vm2624_vm9 = vcmp.ne.s32.totalorder %v618_v19, 0  ;;  %v4007_v52 = vmov 0  ;;  %v672_v29 = vsel %vm2551_vm11, %v1887_v3, -inf  ;;  %v673_v0 = vsel %vm2555_vm1, %v4009_v16, -inf  ;;  %v4022_v41 = vld [vmem:[#allocation34_spill] sm:$0xff] }
  0xac   : > { %v4008_v52 = vsel %vm2624_vm9, 4294967295, %v4007_v52  ;;  %v674_v63 = vsel %vm2555_vm1, %v4010_v8, -inf  ;;  %v675_v56 = vsel %vm2559_vm10, %v4011_v10, -inf  ;;  %vm4012_vm5 = vcmp.eq.s32.totalorder %v3973_v1, 1 }
  0xad   : > { %v473_v19 = vsel %vm4012_vm5, 0.0, %v468_v6  ;;  %vm4013_vm7 = vcmp.eq.s32.totalorder %v2431_v30, 1  ;;  %vm4014_vm11 = vcmp.eq.s32.totalorder %v2433_v25, 1  ;;  %vm4015_vm9 = vcmp.eq.s32.totalorder %v2445_v60, 1  ;;  %v4018_v30 = vld [vmem:[#allocation31_spill] sm:$0xff] }
  0xae   : > { %v493_v43 = vsel %vm4013_vm7, 0.0, %v488_v45  ;;  %v513_v58 = vsel %vm4014_vm11, 0.0, %v508_v28  ;;  %v533_v48 = vsel %vm4015_vm9, 0.0, %v528_v46  ;;  %vm4016_vm1 = vcmask 1040384   ;;  %v4019_v28 = vld [vmem:[#allocation32_spill] sm:$0xff]  ;;  %v4021_v45 = vld [vmem:[#allocation33_spill] sm:$0xff] }
  0xaf   : > { %v535_v13 = vsel %vm4016_vm1, %v473_v19, %v493_v43  ;;  %v676_v1 = vsel %vm2559_vm10, %v4017_v24, -inf  ;;  %v677_v25 = vsel %vm2563_vm4, %v4018_v30, -inf  ;;  %v678_v60 = vsel %vm2563_vm4, %v4019_v28, -inf  ;;  %v4025_v30 = vld [vmem:[#allocation36_spill] sm:$0xff]  ;;  %v4026_v28 = vld [vmem:[#allocation37_spill] sm:$0xff] }
  0xb0   : > { %vm4020_vm9 = vcmask 1041408   ;;  %v679_v23 = vsel %vm2567_vm14, %v4021_v45, -inf  ;;  %v680_v6 = vsel %vm2567_vm14, %v4022_v41, -inf  ;;  %v681_v19 = vsel %vm2571_vm12, %v4023_v31, -inf  ;;  %v4038_v41 = vld [vmem:[#allocation46_spill] sm:$0xff] }
  0xb1   : > { %v537_v46 = vsel %vm4020_vm9, %v535_v13, %v513_v58  ;;  %vm4024_vm10 = vcmask 1042432   ;;  %v682_v44 = vsel %vm2571_vm12, %v4025_v30, -inf  ;;  %v683_v58 = vsel %vm2575_vm15, %v4026_v28, -inf }
  0xb2   : > { %v539_v43 = vsel %vm4024_vm10, %v537_v46, %v533_v48  ;;  %v684_v13 = vsel %vm2575_vm15, %v1971_v36, -inf  ;;  %vm4027_vm4 = vcmask 60416   ;;  %v685_v31 = vsel %vm2579_vm6, %v4028_v4, -inf  ;;  %v4031_v36 = vld [vmem:[#allocation45_spill] sm:$0xff] }
  0xb3   : > { %541 = vst.msk [vmem:[%s2651_s3] sm:$0xf] %vm4027_vm4, %v539_v43  ;;  %v686_v48 = vsel %vm2579_vm6, %v1992_v32, -inf  ;;  %v687_v46 = vsel %vm2588_vm13, %v4029_v14, -inf  ;;  %v688_v28 = vsel %vm2588_vm13, %v2010_v27, -inf  ;;  %v689_v43 = vsel %vm2592_vm2, %v4030_v35, -inf }
  0xb4   : > { %v690_v4 = vsel %vm2592_vm2, %v2028_v17, -inf  ;;  %v691_v39 = vsel %vm2596_vm8, %v4031_v36, -inf  ;;  %vm4032_vm6 = vcmask 64512   ;;  %v693_v14 = vsel %vm2603_vm0, %v4038_v41, -inf }
  0xb5   : > { %v699_v32 = vsel %vm4032_vm6, %v667_v37, -inf  ;;  %vm4033_vm15 = vmmov %vm4032_vm6  ;;  %v694_v37 = vsel %vm2603_vm0, %v2076_v20, -inf  ;;  %vm4043_vm11 = vnez %v4008_v52  ;;  %vm4048_vm4 = vnez %v3975_v26 }
  0xb6   : > { %v700_v22 = vsel %vm4033_vm15, %v669_v12, -inf  ;;  %vm4034_vm12 = vmmov %vm4032_vm6  ;;  %vm4051_vm15 = vnez %v3977_v42  ;;  %v4071_v52 = vsel %vm2596_vm8, %v2046_v9, -inf  ;;  %vm4076_vm8 = vnez %v3919_v38 }
  0xb7   : > { %v701_v27 = vsel %vm4034_vm12, %v671_v51, -inf  ;;  %vm4035_vm14 = vmmov %vm4032_vm6 }
  0xb8   : > { %v703_v35 = vsel %vm4035_vm14, %v673_v0, -inf  ;;  %v702_v30 = vmax.f32 %v699_v32, %v701_v27  ;;  %vm4036_vm7 = vmmov %vm4032_vm6  ;;  %v4041_v27 = vld [vmem:[#allocation48_spill] sm:$0xff]  ;;  %v4042_v0 = vld [vmem:[#allocation49_spill] sm:$0xff] }
  0xb9   : > { %v704_v50 = vmax.f32 %v700_v22, %v703_v35  ;;  %v705_v17 = vsel %vm4036_vm7, %v675_v56, -inf  ;;  %vm4037_vm5 = vmmov %vm4032_vm6  ;;  %v695_v32 = vsel %vm2620_vm3, %v4041_v27, -inf  ;;  %v697_v56 = vsel %vm4043_vm11, %v4042_v0, -inf }
  0xba   : > { %v707_v36 = vsel %vm4037_vm5, %v677_v25, -inf  ;;  %vm4039_vm13 = vmmov %vm4037_vm5  ;;  %v706_v25 = vmax.f32 %v702_v30, %v705_v17  ;;  %v4049_v27 = vsel %vm4048_vm4, %v1864_v57, -inf  ;;  %v4052_v17 = vsel %vm4051_vm15, %v1870_v59, -inf }
  0xbb   : > { %v709_v51 = vsel %vm4039_vm13, %v679_v23, -inf  ;;  %vm4040_vm2 = vmmov %vm4037_vm5  ;;  %v708_v35 = vmax.f32 %v704_v50, %v707_v36 }
  0xbc   : > { %v711_v12 = vsel %vm4040_vm2, %v681_v19, -inf  ;;  %vm4044_vm1 = vmmov %vm4040_vm2  ;;  %v710_v19 = vmax.f32 %v706_v25, %v709_v51 }
  0xbd   : > { %v713_v22 = vsel %vm4044_vm1, %v683_v58, -inf  ;;  %vm4045_vm9 = vmmov %vm4044_vm1  ;;  %v712_v20 = vmax.f32 %v708_v35, %v711_v12 }
  0xbe   : > { %v715_v41 = vsel %vm4045_vm9, %v685_v31, -inf  ;;  %vm4046_vm10 = vmmov %vm4044_vm1 }
  0xbf   : > { %v717_v62 = vsel %vm4046_vm10, %v687_v46, -inf  ;;  %vm4047_vm0 = vmmov %vm4044_vm1  ;;  %v714_v46 = vmax.f32 %v710_v19, %v713_v22 }
  0xc0   : > { %v719_v23 = vsel %vm4047_vm0, %v689_v43, -inf  ;;  %vm4050_vm6 = vmmov %vm4047_vm0  ;;  %v716_v43 = vmax.f32 %v712_v20, %v715_v41 }
  0xc1   : > { %v730_v45 = vsel %vm4050_vm6, %v4049_v27, -inf  ;;  %vm4053_vm12 = vmmov %vm4047_vm0 }
  0xc2   : > { %v731_v36 = vsel %vm4053_vm12, %v4052_v17, -inf  ;;  %vm4054_vm14 = vmmov %vm4047_vm0  ;;  %v720_v20 = vmax.f32 %v716_v43, %v719_v23 }
  0xc3   : > { %v732_v30 = vsel %vm4054_vm14, %v672_v29, -inf  ;;  %vm4055_vm7 = vmmov %vm4047_vm0 }
  0xc4   : > { %v734_v31 = vsel %vm4055_vm7, %v674_v63, -inf  ;;  %vm4056_vm5 = vmmov %vm4047_vm0  ;;  %v733_v42 = vmax.f32 %v730_v45, %v732_v30  ;;  %v725_v45 = vsel %vm4047_vm0, %v695_v32, -inf }
  0xc5   : > { %v736_v26 = vsel %vm4056_vm5, %v676_v1, -inf  ;;  %vm4057_vm13 = vmmov %vm4047_vm0  ;;  %v735_v50 = vmax.f32 %v731_v36, %v734_v31  ;;  %v718_v1 = vmax.f32 %v714_v46, %v717_v62  ;;  %v2823_v46 = vstv %s773_s20 }
  0xc6   : > { %v738_v58 = vsel %vm4057_vm13, %v678_v60, -inf  ;;  %vm4058_vm2 = vmmov %vm4047_vm0  ;;  %v737_v60 = vmax.f32 %v733_v42, %v736_v26  ;;  %vm4077_vm13 = vnez %v3926_v47 }
  0xc7   : > { %v721_v29 = vsel %vm4058_vm2, %v691_v39, -inf  ;;  %vm4059_vm1 = vmmov %vm4047_vm0  ;;  %v739_v41 = vmax.f32 %v735_v50, %v738_v58  ;;  %vm4078_vm2 = vnez %v3941_v33 }
  0xc8   : > { %v723_v51 = vsel %vm4059_vm1, %v693_v14, -inf  ;;  %vm4060_vm9 = vmmov %vm4047_vm0  ;;  %v722_v39 = vmax.f32 %v718_v1, %v721_v29  ;;  %vm4079_vm1 = vnez %v3943_v21  ;;  %v2839_v1 = vstv %s789_s12 }
  0xc9   : > { %v740_v12 = vsel %vm4060_vm9, %v680_v6, -inf  ;;  %vm4061_vm10 = vmmov %vm4047_vm0  ;;  %v724_v27 = vmax.f32 %v720_v20, %v723_v51  ;;  %v4080_v51 = vld [vmem:[#allocation9_spill] sm:$0xff]  ;;  %v2841_v20 = vstv %s805_s2 }
  0xca   : > { %v742_v63 = vsel %vm4061_vm10, %v682_v44, -inf  ;;  %vm4063_vm4 = vmmov %vm4047_vm0  ;;  %v741_v25 = vmax.f32 %v737_v60, %v740_v12  ;;  %v726_v22 = vmax.f32 %v722_v39, %v725_v45  ;;  %vm4081_vm9 = vnez %v4080_v51  ;;  %v4082_v12 = vld [vmem:[#allocation11_spill] sm:$0xff]  ;;  %v4087_v45 = vld [vmem:[#allocation12_spill] sm:$0xff] }
  0xcb   : > { %v727_v6 = vsel %vm4063_vm4, %v697_v56, -inf  ;;  %vm4064_vm6 = vmmov %vm4047_vm0  ;;  %v743_v35 = vmax.f32 %v739_v41, %v742_v63  ;;  %vm4083_vm10 = vnez %v4082_v12  ;;  %v2843_v60 = vstv %s821_s23  ;;  %v4085_v41 = vld [vmem:[#allocation10_spill] sm:$0xff] }
  0xcc   : > { %v744_v44 = vsel %vm4064_vm6, %v684_v13, -inf  ;;  %vm4065_vm15 = vmmov %vm4047_vm0  ;;  %v696_v13 = vsel %vm2620_vm3, %v2327_v61, -inf  ;;  %v728_v62 = vmax.f32 %v724_v27, %v727_v6  ;;  %vm4086_vm4 = vnez %v4085_v41  ;;  %v4104_v12 = vld [vmem:[#allocation22_spill] sm:$0xff] }
  0xcd   : > { %v746_v14 = vsel %vm4065_vm15, %v686_v48, -inf  ;;  %v698_v48 = vsel %vm4043_vm11, %v2345_v34, -inf  ;;  %vm4068_vm12 = vmmov %vm4047_vm0  ;;  %v745_v11 = vmax.f32 %v741_v25, %v744_v44  ;;  %vm4088_vm6 = vnez %v4087_v45 }
  0xce   : > { %v748_v32 = vsel %vm4068_vm12, %v688_v28, -inf  ;;  %vm4069_vm14 = vmmov %vm4047_vm0  ;;  %v747_v23 = vmax.f32 %v743_v35, %v746_v14  ;;  %v729_v19 = vmax.f32 %v726_v22, %v728_v62 }
  0xcf   : > { %v750_v56 = vsel %vm4069_vm14, %v690_v4, -inf  ;;  %vm4072_vm3 = vmmov %vm4047_vm0  ;;  %v749_v17 = vmax.f32 %v745_v11, %v748_v32 }
  0xd0   : > { %v752_v28 = vsel %vm4072_vm3, %v4071_v52, -inf  ;;  %vm4073_vm11 = vmmov %vm4047_vm0  ;;  %v751_v36 = vmax.f32 %v747_v23, %v750_v56  ;;  %v761_v58 = vsel %vm4076_vm8, %v729_v19, -inf  ;;  %v793_v43 = vsel %vm4078_vm2, %v729_v19, -inf }
  0xd1   : > { %v754_v4 = vsel %vm4073_vm11, %v694_v37, -inf  ;;  %vm4074_vm7 = vmmov %vm4047_vm0  ;;  %v753_v54 = vmax.f32 %v749_v17, %v752_v28  ;;  %v777_v37 = vsel %vm4077_vm13, %v729_v19, -inf  ;;  %v809_v29 = vsel %vm4079_vm1, %v729_v19, -inf }
  0xd2   : > { %v756_v30 = vsel %vm4074_vm7, %v696_v13, -inf  ;;  %vm4075_vm5 = vmmov %vm4047_vm0  ;;  %v755_v26 = vmax.f32 %v751_v36, %v754_v4  ;;  %v795_v27 = vsel %vm4072_vm3, %v793_v43, -inf  ;;  %vm4093_vm7 = vnez %v3947_v15 }
  0xd3   : > { %v758_v31 = vsel %vm4075_vm5, %v698_v48, -inf  ;;  %v757_v42 = vmax.f32 %v753_v54, %v756_v30  ;;  %vm4084_vm0 = vmand %vm4081_vm9, %vm4083_vm10  ;;  %vm4094_vm5 = vnez %v3951_v53  ;;  %vm4095_vm9 = vnez %v3956_v18 }
  0xd4   : > { %v759_v50 = vmax.f32 %v755_v26, %v758_v31  ;;  %v2837_v63 = vsel %vm4084_vm0, 1, %v3936_v55  ;;  %vm4089_vm15 = vmand %vm4086_vm4, %vm4088_vm6  ;;  %vm4096_vm10 = vnez %v3960_v40  ;;  %v4101_v31 = vld [vmem:[#allocation19_spill] sm:$0xff]  ;;  %v4102_v26 = vld [vmem:[#allocation20_spill] sm:$0xff]  ;;  %vm4134_vm13 = vcmp.eq.s32.totalorder %v2823_v46, 1 }
  0xd5   : > { %v2851_v6 = vsel %vm4089_vm15, 1, %v3936_v55  ;;  %vm4090_vm12 = vmmov %vm4072_vm3  ;;  %v845_v35 = vrot.slane %v2837_v63, %v1699_v5  ;;  %v849_v13 = vrot.slane %v2837_v63, %v1705_v7  ;;  %v853_v48 = vrot.slane %v2837_v63, %v3952_v2 }
  0xd6   : > { %v760_v44 = vmax.f32 %v757_v42, %v759_v50  ;;  %v763_v14 = vsel %vm4090_vm12, %v761_v58, -inf  ;;  %vm4091_vm14 = vmmov %vm4072_vm3  ;;  %v857_v30 = vrot.slane %v2837_v63, %v3961_v49  ;;  %v861_v54 = vrot.slane %v2837_v63, %v4101_v31 }
  0xd7   : > { %v779_v39 = vsel %vm4091_vm14, %v777_v37, -inf  ;;  %vm4092_vm11 = vmmov %vm4072_vm3  ;;  %v865_v58 = vrot.slane %v2837_v63, %v4102_v26  ;;  %v4103_v37 = vld [vmem:[#allocation21_spill] sm:$0xff]  ;;  %v873_v41 = vrot.slane %v2837_v63, %v4104_v12  ;;  %v877_v45 = vrot.slane %v2851_v6, %v1699_v5 }
  0xd8   : > { %v811_v25 = vsel %vm4092_vm11, %v809_v29, -inf  ;;  %v762_v32 = vsel %vm4093_vm7, %v760_v44, -inf  ;;  %v778_v56 = vsel %vm4094_vm5, %v760_v44, -inf  ;;  %v794_v22 = vsel %vm4095_vm9, %v760_v44, -inf  ;;  %vm4097_vm0 = vmmov %vm4072_vm3 }
  0xd9   : > { %v810_v62 = vsel %vm4096_vm10, %v760_v44, -inf  ;;  %v764_v11 = vsel %vm4097_vm0, %v762_v32, -inf  ;;  %vm4098_vm4 = vmmov %vm4097_vm0  ;;  %v869_v43 = vrot.slane %v2837_v63, %v4103_v37  ;;  %v881_v44 = vrot.slane %v2851_v6, %v1705_v7 }
  0xda   : > { %v780_v23 = vsel %vm4098_vm4, %v778_v56, -inf  ;;  %vm4099_vm6 = vmmov %vm4097_vm0  ;;  %v765_v4 = vmax.f32 %v763_v14, %v764_v11  ;;  %v885_v14 = vrot.slane %v2851_v6, %v3952_v2  ;;  %v889_v56 = vrot.slane %v2851_v6, %v3961_v49 }
  0xdb   : > { %v796_v52 = vsel %vm4099_vm6, %v794_v22, -inf  ;;  %vm4100_vm15 = vmmov %vm4097_vm0  ;;  %v781_v19 = vmax.f32 %v779_v39, %v780_v23  ;;  %v893_v22 = vrot.slane %v2851_v6, %v4101_v31  ;;  %v897_v63 = vrot.slane %v2851_v6, %v4102_v26 }
  0xdc   : > { %v812_v28 = vsel %vm4100_vm15, %v810_v62, -inf  ;;  %v797_v17 = vmax.f32 %v795_v27, %v796_v52  ;;  %v766_v42 = vrot.slane %v765_v4, 4  ;;  %v901_v62 = vrot.slane %v2851_v6, %v4103_v37  ;;  %v4150_v37 = vld [vmem:[#allocation33_spill] sm:$0xff] }
  0xdd   : > { %v813_v36 = vmax.f32 %v811_v25, %v812_v28  ;;  %v782_v50 = vrot.slane %v781_v19, 4  ;;  %vm2905_vm0 = vcmp.ne.s32.totalorder %v845_v35, 0  ;;  %vm2909_vm4 = vcmp.ne.s32.totalorder %v849_v13, 0 }
  0xde   : > { %v798_v29 = vrot.slane %v797_v17, 4  ;;  %v767_v39 = vmax.f32 %v765_v4, %v766_v42  ;;  %v905_v4 = vrot.slane %v2851_v6, %v4104_v12  ;;  %vm2913_vm6 = vcmp.ne.s32.totalorder %v853_v48, 0  ;;  %v4152_v6 = vld [vmem:[#allocation35_spill] sm:$0xff] }
  0xdf   : > { %v814_v51 = vrot.slane %v813_v36, 4  ;;  %v783_v27 = vmax.f32 %v781_v19, %v782_v50  ;;  %vm2917_vm15 = vcmp.ne.s32.totalorder %v857_v30, 0  ;;  %vm2921_vm11 = vcmp.ne.s32.totalorder %v861_v54, 0 }
  0xe0   : > { %v799_v25 = vmax.f32 %v797_v17, %v798_v29  ;;  %v768_v11 = vrot.slane %v767_v39, 2  ;;  %vm2925_vm3 = vcmp.ne.s32.totalorder %v865_v58, 0  ;;  %vm2929_vm14 = vcmp.ne.s32.totalorder %v869_v43, 0 }
  0xe1   : > { %v815_v32 = vmax.f32 %v813_v36, %v814_v51  ;;  %v784_v23 = vrot.slane %v783_v27, 2  ;;  %vm2933_vm12 = vcmp.ne.s32.totalorder %v873_v41, 0  ;;  %vm2937_vm10 = vcmp.ne.s32.totalorder %v877_v45, 0  ;;  %v4149_v36 = vld [vmem:[#allocation32_spill] sm:$0xff] }
  0xe2   : > { %v800_v52 = vrot.slane %v799_v25, 2  ;;  %v769_v42 = vmax.f32 %v767_v39, %v768_v11  ;;  %vm2941_vm9 = vcmp.ne.s32.totalorder %v881_v44, 0  ;;  %v4123_v58 = vmov 0 }
  0xe3   : > { %v816_v28 = vrot.slane %v815_v32, 2  ;;  %v785_v50 = vmax.f32 %v783_v27, %v784_v23  ;;  %v4124_v58 = vsel %vm2941_vm9, 4294967295, %v4123_v58  ;;  %vm2945_vm5 = vcmp.ne.s32.totalorder %v885_v14, 0  ;;  %v4133_v14 = vld [vmem:[#allocation24_spill] sm:$0xff] }
  0xe4   : > { %v801_v29 = vmax.f32 %v799_v25, %v800_v52  ;;  %v770_v48 = vrot.slane %v769_v42, 1  ;;  %v4125_v43 = vmov 0  ;;  %vm2949_vm7 = vcmp.ne.s32.totalorder %v889_v56, 0 }
  0xe5   : > { %v817_v51 = vmax.f32 %v815_v32, %v816_v28  ;;  %v786_v39 = vrot.slane %v785_v50, 1  ;;  %v4126_v43 = vsel %vm2945_vm5, 4294967295, %v4125_v43  ;;  %v4127_v41 = vmov 0 }
  0xe6   : > { %v802_v27 = vrot.slane %v801_v29, 1  ;;  %v771_v32 = vmax.f32 %v769_v42, %v770_v48  ;;  %v4128_v41 = vsel %vm2949_vm7, 4294967295, %v4127_v41  ;;  %vm2953_vm1 = vcmp.ne.s32.totalorder %v893_v22, 0 }
  0xe7   : > { %v818_v25 = vrot.slane %v817_v51, 1  ;;  %v787_v11 = vmax.f32 %v785_v50, %v786_v39  ;;  %v4129_v45 = vmov 0  ;;  %vm2957_vm2 = vcmp.ne.s32.totalorder %v897_v63, 0 }
  0xe8   : > { %v803_v23 = vmax.f32 %v801_v29, %v802_v27  ;;  %v4130_v45 = vsel %vm2953_vm1, 4294967295, %v4129_v45  ;;  %v4131_v44 = vmov 0  ;;  %v954_v28 = vsel %vm2905_vm0, %v4133_v14, -inf  ;;  %v4155_v14 = vld [vmem:[#allocation38_spill] sm:$0xff] }
  0xe9   : > { %v819_v52 = vmax.f32 %v817_v51, %v818_v25  ;;  %v4132_v44 = vsel %vm2957_vm2, 4294967295, %v4131_v44  ;;  %v776_v42 = vsel %vm4134_vm13, 0.0, %v771_v32  ;;  %vm4135_vm8 = vcmp.eq.s32.totalorder %v2839_v1, 1  ;;  %v4151_v32 = vld [vmem:[#allocation34_spill] sm:$0xff] }
  0xea   : > { %v792_v56 = vsel %vm4135_vm8, 0.0, %v787_v11  ;;  %vm4136_vm7 = vcmp.eq.s32.totalorder %v2841_v20, 1  ;;  %vm4137_vm5 = vcmp.eq.s32.totalorder %v2843_v60, 1  ;;  %vm2972_vm1 = vcmp.ne.s32.totalorder %v901_v62, 0  ;;  %v4143_v20 = vld [vmem:[#allocation25_spill] sm:$0xff]  ;;  %v4153_v11 = vld [vmem:[#allocation36_spill] sm:$0xff] }
  0xeb   : > { %v808_v22 = vsel %vm4136_vm7, 0.0, %v803_v23  ;;  %v824_v63 = vsel %vm4137_vm5, 0.0, %v819_v52  ;;  %vm2976_vm2 = vcmp.ne.s32.totalorder %v905_v4, 0  ;;  %vm4142_vm9 = vcmask 1040384   ;;  %v4145_v4 = vld [vmem:[#allocation26_spill] sm:$0xff]  ;;  %v4154_v52 = vld [vmem:[#allocation37_spill] sm:$0xff] }
  0xec   : > { %v825_v46 = vsel %vm4142_vm9, %v776_v42, %v792_v56  ;;  %v955_v1 = vsel %vm2905_vm0, %v1864_v57, -inf  ;;  %v956_v60 = vsel %vm2909_vm4, %v4143_v20, -inf  ;;  %v957_v62 = vsel %vm2909_vm4, %v1870_v59, -inf  ;;  %v4156_v56 = vld [vmem:[#allocation39_spill] sm:$0xff]  ;;  %v4161_v20 = vld [vmem:[#allocation42_spill] sm:$0xff] }
  0xed   : > { %vm4144_vm8 = vcmask 1041408   ;;  %v958_v48 = vsel %vm2913_vm6, %v4145_v4, -inf  ;;  %v959_v39 = vsel %vm2913_vm6, %v1887_v3, -inf  ;;  %v960_v57 = vsel %vm2917_vm15, %v4009_v16, -inf  ;;  %v4148_v3 = vld [vmem:[#allocation31_spill] sm:$0xff] }
  0xee   : > { %v826_v51 = vsel %vm4144_vm8, %v825_v46, %v808_v22  ;;  %vm4146_vm13 = vcmask 1042432   ;;  %v961_v59 = vsel %vm2917_vm15, %v4010_v8, -inf  ;;  %v962_v17 = vsel %vm2921_vm11, %v4011_v10, -inf  ;;  %v4158_v22 = vld [vmem:[#allocation40_spill] sm:$0xff]  ;;  %v4159_v46 = vld [vmem:[#allocation41_spill] sm:$0xff]  ;;  %v4162_v4 = vld [vmem:[#allocation43_spill] sm:$0xff] }
  0xef   : > { %v827_v19 = vsel %vm4146_vm13, %v826_v51, %v824_v63  ;;  %v963_v27 = vsel %vm2921_vm11, %v4017_v24, -inf  ;;  %vm4147_vm7 = vcmask 60416   ;;  %v964_v16 = vsel %vm2925_vm3, %v4148_v3, -inf }
  0xf0   : > { %828 = vst.msk [vmem:[%s2651_s3 + $0x4] sm:$0xf] %vm4147_vm7, %v827_v19  ;;  %v965_v25 = vsel %vm2925_vm3, %v4149_v36, -inf  ;;  %v966_v8 = vsel %vm2929_vm14, %v4150_v37, -inf  ;;  %v967_v10 = vsel %vm2929_vm14, %v4151_v32, -inf  ;;  %v968_v24 = vsel %vm2933_vm12, %v4152_v6, -inf }
  0xf1   : > { %v969_v23 = vsel %vm2933_vm12, %v4153_v11, -inf  ;;  %v970_v35 = vsel %vm2937_vm10, %v4154_v52, -inf  ;;  %v971_v42 = vsel %vm2937_vm10, %v4155_v14, -inf  ;;  %vm4157_vm5 = vnez %v4124_v58  ;;  %v4164_v19 = vld [vmem:[#allocation44_spill] sm:$0xff]  ;;  %v4165_v36 = vld [vmem:[#allocation45_spill] sm:$0xff] }
  0xf2   : > { %v972_v13 = vsel %vm4157_vm5, %v4156_v56, -inf  ;;  %v973_v63 = vsel %vm4157_vm5, %v4158_v22, -inf  ;;  %vm4160_vm9 = vnez %v4126_v43  ;;  %vm4163_vm12 = vnez %v4128_v41  ;;  %v4173_v22 = vld [vmem:[#allocation46_spill] sm:$0xff] }
  0xf3   : > { %v974_v30 = vsel %vm4160_vm9, %v4159_v46, -inf  ;;  %v975_v51 = vsel %vm4160_vm9, %v4161_v20, -inf  ;;  %v976_v54 = vsel %vm4163_vm12, %v4162_v4, -inf  ;;  %v977_v3 = vsel %vm4163_vm12, %v4164_v19, -inf  ;;  %v4175_v20 = vld [vmem:[#allocation47_spill] sm:$0xff] }
  0xf4   : > { %vm4166_vm10 = vnez %v4130_v45  ;;  %vm4167_vm14 = vcmask 64512   ;;  %vm4174_vm15 = vnez %v4132_v44 }
  0xf5   : > { %v978_v58 = vsel %vm4166_vm10, %v4165_v36, -inf  ;;  %v979_v37 = vsel %vm4166_vm10, %v2046_v9, -inf  ;;  %v986_v32 = vsel %vm4167_vm14, %v954_v28, -inf  ;;  %vm4168_vm3 = vmmov %vm4167_vm14  ;;  %v980_v46 = vsel %vm4174_vm15, %v4173_v22, -inf }
  0xf6   : > { %v987_v43 = vsel %vm4168_vm3, %v956_v60, -inf  ;;  %vm4169_vm11 = vmmov %vm4168_vm3  ;;  %v981_v28 = vsel %vm4174_vm15, %v4175_v20, -inf  ;;  %v3164_v9 = vstv %s1060_s4 }
  0xf7   : > { %v988_v6 = vsel %vm4169_vm11, %v958_v48, -inf  ;;  %vm4170_vm0 = vmmov %vm4168_vm3 }
  0xf8   : > { %v990_v11 = vsel %vm4170_vm0, %v960_v57, -inf  ;;  %v989_v52 = vmax.f32 %v986_v32, %v988_v6  ;;  %vm4171_vm4 = vmmov %vm4170_vm0  ;;  %v4178_v57 = vld [vmem:[#allocation48_spill] sm:$0xff] }
  0xf9   : > { %v991_v41 = vmax.f32 %v987_v43, %v990_v11  ;;  %v992_v14 = vsel %vm4171_vm4, %v962_v17, -inf  ;;  %vm4172_vm6 = vmmov %vm4170_vm0  ;;  %v982_v4 = vsel %vm2972_vm1, %v4178_v57, -inf  ;;  %v984_v17 = vsel %vm2976_vm2, %v4042_v0, -inf }
  0xfa   : > { %v994_v56 = vsel %vm4172_vm6, %v964_v16, -inf  ;;  %vm4176_vm8 = vmmov %vm4170_vm0  ;;  %v993_v16 = vmax.f32 %v989_v52, %v992_v14  ;;  %v1021_v0 = vsel %vm4170_vm0, %v961_v59, -inf }
  0xfb   : > { %v996_v60 = vsel %vm4176_vm8, %v966_v8, -inf  ;;  %vm4177_vm13 = vmmov %vm4170_vm0  ;;  %v995_v19 = vmax.f32 %v991_v41, %v994_v56 }
  0xfc   : > { %v998_v48 = vsel %vm4177_vm13, %v968_v24, -inf  ;;  %vm4179_vm7 = vmmov %vm4170_vm0  ;;  %v997_v24 = vmax.f32 %v993_v16, %v996_v60 }
  0xfd   : > { %v1000_v36 = vsel %vm4179_vm7, %v970_v35, -inf  ;;  %vm4180_vm5 = vmmov %vm4170_vm0  ;;  %v999_v43 = vmax.f32 %v995_v19, %v998_v48 }
  0xfe   : > { %v1002_v32 = vsel %vm4180_vm5, %v972_v13, -inf  ;;  %vm4181_vm9 = vmmov %vm4170_vm0 }
  0xff   : > { %v1004_v44 = vsel %vm4181_vm9, %v974_v30, -inf  ;;  %vm4182_vm12 = vmmov %vm4170_vm0  ;;  %v1001_v30 = vmax.f32 %v997_v24, %v1000_v36 }
 0x100   : > { %v1006_v8 = vsel %vm4182_vm12, %v976_v54, -inf  ;;  %vm4183_vm14 = vmmov %vm4170_vm0  ;;  %v1003_v54 = vmax.f32 %v999_v43, %v1002_v32 }
 0x101   : > { %v1017_v6 = vsel %vm4183_vm14, %v955_v1, -inf  ;;  %vm4184_vm3 = vmmov %vm4170_vm0 }
 0x102   : > { %v1018_v11 = vsel %vm4184_vm3, %v957_v62, -inf  ;;  %vm4185_vm11 = vmmov %vm4170_vm0 }
 0x103   : > { %v1019_v22 = vsel %vm4185_vm11, %v959_v39, -inf  ;;  %vm4186_vm4 = vmmov %vm4170_vm0  ;;  %v1022_v62 = vmax.f32 %v1018_v11, %v1021_v0  ;;  %v3178_v11 = vstv %s1076_s30 }
 0x104   : > { %v1023_v35 = vsel %vm4186_vm4, %v963_v27, -inf  ;;  %vm4187_vm6 = vmmov %vm4170_vm0  ;;  %v1020_v1 = vmax.f32 %v1017_v6, %v1019_v22  ;;  %v1005_v27 = vmax.f32 %v1001_v30, %v1004_v44 }
 0x105   : > { %v1025_v13 = vsel %vm4187_vm6, %v965_v25, -inf  ;;  %vm4188_vm15 = vmmov %vm4170_vm0  ;;  %v1007_v25 = vmax.f32 %v1003_v54, %v1006_v8  ;;  %v3186_v54 = vstv %s1108_s13 }
 0x106   : > { %v1008_v39 = vsel %vm4188_vm15, %v978_v58, -inf  ;;  %vm4189_vm8 = vmmov %vm4170_vm0  ;;  %v1024_v14 = vmax.f32 %v1020_v1, %v1023_v35  ;;  %v1026_v56 = vmax.f32 %v1022_v62, %v1025_v13  ;;  %v3182_v13 = vstv %s1092_s7  ;;  %v4214_v1 = vld [vmem:[#allocation14_spill] sm:$0xff]  ;;  %v4216_v62 = vld [vmem:[#allocation16_spill] sm:$0xff] }
 0x107   : > { %v1010_v52 = vsel %vm4189_vm8, %v980_v46, -inf  ;;  %vm4190_vm13 = vmmov %vm4170_vm0  ;;  %v1009_v20 = vmax.f32 %v1005_v27, %v1008_v39  ;;  %vm4210_vm8 = vnez %v3919_v38 }
 0x108   : > { %v1027_v41 = vsel %vm4190_vm13, %v967_v10, -inf  ;;  %vm4191_vm7 = vmmov %vm4170_vm0  ;;  %v1011_v60 = vmax.f32 %v1007_v25, %v1010_v52  ;;  %vm4211_vm13 = vnez %v3926_v47 }
 0x109   : > { %v1029_v59 = vsel %vm4191_vm7, %v969_v23, -inf  ;;  %vm4193_vm5 = vmmov %vm4170_vm0  ;;  %v1028_v48 = vmax.f32 %v1024_v14, %v1027_v41  ;;  %vm4212_vm7 = vnez %v3941_v33 }
 0x10a   : > { %v1012_v10 = vsel %vm4193_vm5, %v982_v4, -inf  ;;  %vm4194_vm9 = vmmov %vm4170_vm0  ;;  %v1030_v57 = vmax.f32 %v1026_v56, %v1029_v59  ;;  %vm4213_vm5 = vnez %v3943_v21 }
 0x10b   : > { %v1014_v58 = vsel %vm4194_vm9, %v984_v17, -inf  ;;  %vm4195_vm12 = vmmov %vm4170_vm0  ;;  %v1013_v16 = vmax.f32 %v1009_v20, %v1012_v10  ;;  %vm4215_vm9 = vnez %v4214_v1 }
 0x10c   : > { %v1031_v23 = vsel %vm4195_vm12, %v971_v42, -inf  ;;  %vm4196_vm14 = vmmov %vm4170_vm0  ;;  %v983_v42 = vsel %vm2972_vm1, %v2327_v61, -inf  ;;  %v1015_v19 = vmax.f32 %v1011_v60, %v1014_v58  ;;  %vm4217_vm12 = vnez %v4216_v62 }
 0x10d   : > { %v1033_v46 = vsel %vm4196_vm14, %v973_v63, -inf  ;;  %v985_v63 = vsel %vm2976_vm2, %v2345_v34, -inf  ;;  %vm4199_vm3 = vmmov %vm4170_vm0  ;;  %v1032_v50 = vmax.f32 %v1028_v48, %v1031_v23  ;;  %v1043_v32 = vsel %vm4170_vm0, %v983_v42, -inf }
 0x10e   : > { %v1035_v4 = vsel %vm4199_vm3, %v975_v51, -inf  ;;  %vm4200_vm11 = vmmov %vm4170_vm0  ;;  %v1034_v61 = vmax.f32 %v1030_v57, %v1033_v46  ;;  %v1016_v51 = vmax.f32 %v1013_v16, %v1015_v19 }
 0x10f   : > { %v1037_v17 = vsel %vm4200_vm11, %v977_v3, -inf  ;;  %vm4202_vm2 = vmmov %vm4170_vm0  ;;  %v1036_v3 = vmax.f32 %v1032_v50, %v1035_v4 }
 0x110   : > { %v1039_v34 = vsel %vm4202_vm2, %v979_v37, -inf  ;;  %vm4203_vm1 = vmmov %vm4170_vm0  ;;  %v1038_v36 = vmax.f32 %v1034_v61, %v1037_v17  ;;  %v4205_v37 = vld [vmem:[#allocation13_spill] sm:$0xff]  ;;  %v1048_v43 = vsel %vm4210_vm8, %v1016_v51, -inf  ;;  %v1064_v6 = vsel %vm4211_vm13, %v1016_v51, -inf }
 0x111   : > { %v1041_v29 = vsel %vm4203_vm1, %v981_v28, -inf  ;;  %vm4204_vm4 = vmmov %vm4170_vm0  ;;  %v1040_v45 = vmax.f32 %v1036_v3, %v1039_v34  ;;  %vm4206_vm10 = vnez %v4205_v37  ;;  %v4207_v28 = vld [vmem:[#allocation15_spill] sm:$0xff]  ;;  %v1080_v22 = vsel %vm4212_vm7, %v1016_v51, -inf  ;;  %v4231_v61 = vld [vmem:[#allocation21_spill] sm:$0xff] }
 0x112   : > { %v1045_v44 = vsel %vm4204_vm4, %v985_v63, -inf  ;;  %v1042_v8 = vmax.f32 %v1038_v36, %v1041_v29  ;;  %vm4208_vm6 = vnez %v4207_v28  ;;  %v1096_v30 = vsel %vm4213_vm5, %v1016_v51, -inf  ;;  %vm4218_vm14 = vmand %vm4215_vm9, %vm4217_vm12 }
 0x113   : > { %vm4209_vm15 = vmand %vm4206_vm10, %vm4208_vm6  ;;  %v1044_v0 = vmax.f32 %v1040_v45, %v1043_v32  ;;  %v3194_v39 = vsel %vm4218_vm14, 1, %v3936_v55  ;;  %vm4224_vm4 = vnez %v3951_v53  ;;  %vm4225_vm10 = vnez %v3956_v18 }
 0x114   : > { %v3172_v24 = vsel %vm4209_vm15, 1, %v3936_v55  ;;  %v1046_v35 = vmax.f32 %v1042_v8, %v1045_v44  ;;  %vm4219_vm3 = vmmov %vm4170_vm0  ;;  %vm4226_vm6 = vnez %v3960_v40  ;;  %v1164_v51 = vrot.slane %v3194_v39, %v1699_v5 }
 0x115   : > { %v1132_v52 = vrot.slane %v3172_v24, %v1699_v5  ;;  %v1136_v41 = vrot.slane %v3172_v24, %v1705_v7  ;;  %v1050_v27 = vsel %vm4219_vm3, %v1048_v43, -inf  ;;  %vm4220_vm11 = vmmov %vm4170_vm0  ;;  %v1140_v10 = vrot.slane %v3172_v24, %v3952_v2 }
 0x116   : > { %v1047_v59 = vmax.f32 %v1044_v0, %v1046_v35  ;;  %v1066_v25 = vsel %vm4220_vm11, %v1064_v6, -inf  ;;  %vm4221_vm2 = vmmov %vm4170_vm0  ;;  %v1144_v55 = vrot.slane %v3172_v24, %v3961_v49  ;;  %v1148_v58 = vrot.slane %v3172_v24, %v4101_v31 }
 0x117   : > { %v1082_v14 = vsel %vm4221_vm2, %v1080_v22, -inf  ;;  %vm4222_vm1 = vmmov %vm4170_vm0  ;;  %vm4223_vm0 = vnez %v3947_v15  ;;  %v1152_v50 = vrot.slane %v3172_v24, %v4102_v26  ;;  %v1156_v34 = vrot.slane %v3172_v24, %v4231_v61 }
 0x118   : > { %v1098_v56 = vsel %vm4222_vm1, %v1096_v30, -inf  ;;  %v1049_v23 = vsel %vm4223_vm0, %v1047_v59, -inf  ;;  %v1065_v46 = vsel %vm4224_vm4, %v1047_v59, -inf  ;;  %v1081_v20 = vsel %vm4225_vm10, %v1047_v59, -inf  ;;  %vm4227_vm15 = vmmov %vm4222_vm1 }
 0x119   : > { %v1097_v60 = vsel %vm4226_vm6, %v1047_v59, -inf  ;;  %v1051_v48 = vsel %vm4227_vm15, %v1049_v23, -inf  ;;  %vm4228_vm9 = vmmov %vm4222_vm1  ;;  %v1160_v29 = vrot.slane %v3172_v24, %v4104_v12  ;;  %v1168_v45 = vrot.slane %v3194_v39, %v1705_v7 }
 0x11a   : > { %v1067_v57 = vsel %vm4228_vm9, %v1065_v46, -inf  ;;  %vm4229_vm12 = vmmov %vm4222_vm1  ;;  %v1052_v4 = vmax.f32 %v1050_v27, %v1051_v48  ;;  %v1172_v8 = vrot.slane %v3194_v39, %v3952_v2  ;;  %v1176_v5 = vrot.slane %v3194_v39, %v3961_v49 }
 0x11b   : > { %v1083_v42 = vsel %vm4229_vm12, %v1081_v20, -inf  ;;  %vm4230_vm14 = vmmov %vm4222_vm1  ;;  %v1068_v17 = vmax.f32 %v1066_v25, %v1067_v57  ;;  %v1180_v37 = vrot.slane %v3194_v39, %v4101_v31  ;;  %v1184_v22 = vrot.slane %v3194_v39, %v4102_v26 }
 0x11c   : > { %v1099_v63 = vsel %vm4230_vm14, %v1097_v60, -inf  ;;  %v1084_v16 = vmax.f32 %v1082_v14, %v1083_v42  ;;  %v1053_v3 = vrot.slane %v1052_v4, 4  ;;  %v1188_v0 = vrot.slane %v3194_v39, %v4231_v61 }
 0x11d   : > { %v1100_v19 = vmax.f32 %v1098_v56, %v1099_v63  ;;  %v1069_v36 = vrot.slane %v1068_v17, 4  ;;  %v1192_v7 = vrot.slane %v3194_v39, %v4104_v12  ;;  %vm3248_vm15 = vcmp.ne.s32.totalorder %v1132_v52, 0 }
 0x11e   : > { %v1085_v32 = vrot.slane %v1084_v16, 4  ;;  %v1054_v28 = vmax.f32 %v1052_v4, %v1053_v3  ;;  %vm3252_vm9 = vcmp.ne.s32.totalorder %v1136_v41, 0  ;;  %vm3256_vm12 = vcmp.ne.s32.totalorder %v1140_v10, 0 }
 0x11f   : > { %v1101_v44 = vrot.slane %v1100_v19, 4  ;;  %v1070_v24 = vmax.f32 %v1068_v17, %v1069_v36  ;;  %vm3260_vm14 = vcmp.ne.s32.totalorder %v1144_v55, 0  ;;  %vm3264_vm1 = vcmp.ne.s32.totalorder %v1148_v58, 0 }
 0x120   : > { %v1086_v43 = vmax.f32 %v1084_v16, %v1085_v32  ;;  %v1055_v49 = vrot.slane %v1054_v28, 2  ;;  %vm3268_vm2 = vcmp.ne.s32.totalorder %v1152_v50, 0  ;;  %vm3272_vm11 = vcmp.ne.s32.totalorder %v1156_v34, 0  ;;  %v1486_v50 = vld [vmem:[%s1829_s17] sm:$0xff]  ;;  %v3316_v34 = vld [vmem:[%s1829_s17 + $0x8] sm:$0xff] }
 0x121   : > { %v1102_v6 = vmax.f32 %v1100_v19, %v1101_v44  ;;  %v1071_v35 = vrot.slane %v1070_v24, 2  ;;  %vm3276_vm3 = vcmp.ne.s32.totalorder %v1160_v29, 0  ;;  %vm3280_vm6 = vcmp.ne.s32.totalorder %v1164_v51, 0  ;;  %v1488_v51 = vld [vmem:[%s1829_s17 + $0x10] sm:$0xff] }
 0x122   : > { %v1087_v31 = vrot.slane %v1086_v43, 2  ;;  %v1056_v39 = vmax.f32 %v1054_v28, %v1055_v49  ;;  %vm3284_vm10 = vcmp.ne.s32.totalorder %v1168_v45, 0  ;;  %vm3288_vm4 = vcmp.ne.s32.totalorder %v1172_v8, 0 }
 0x123   : > { %v1103_v30 = vrot.slane %v1102_v6, 2  ;;  %v1072_v52 = vmax.f32 %v1070_v24, %v1071_v35  ;;  %vm3292_vm0 = vcmp.ne.s32.totalorder %v1176_v5, 0  ;;  %v4254_v60 = vmov 0  ;;  %v3334_v5 = vld [vmem:[%s1829_s17 + $0x18] sm:$0xff]  ;;  %v1492_v24 = vld [vmem:[%s1829_s17 + $0x30] sm:$0xff]  ;;  %v3363_v35 = vld [vmem:[%s1829_s17 + $0x48] sm:$0xff] }
 0x124   : > { %v1088_v59 = vmax.f32 %v1086_v43, %v1087_v31  ;;  %v1057_v10 = vrot.slane %v1056_v39, 1  ;;  %v4255_v60 = vsel %vm3292_vm0, 4294967295, %v4254_v60  ;;  %vm3296_vm5 = vcmp.ne.s32.totalorder %v1180_v37, 0  ;;  %v1490_v37 = vld [vmem:[%s1829_s17 + $0x20] sm:$0xff] }
 0x125   : > { %v1104_v27 = vmax.f32 %v1102_v6, %v1103_v30  ;;  %v1073_v55 = vrot.slane %v1072_v52, 1  ;;  %v4256_v48 = vmov 0  ;;  %vm3300_vm7 = vcmp.ne.s32.totalorder %v1184_v22, 0  ;;  %v3353_v6 = vld [vmem:[%s1829_s17 + $0x38] sm:$0xff]  ;;  %v1496_v30 = vld [vmem:[%s1829_s17 + $0x50] sm:$0xff] }
 0x126   : > { %v1089_v58 = vrot.slane %v1088_v59, 1  ;;  %v4257_v48 = vsel %vm3296_vm5, 4294967295, %v4256_v48  ;;  %v1058_v57 = vmax.f32 %v1056_v39, %v1057_v10  ;;  %v4258_v17 = vmov 0 }
 0x127   : > { %v1105_v23 = vrot.slane %v1104_v27, 1  ;;  %v1074_v42 = vmax.f32 %v1072_v52, %v1073_v55  ;;  %v4259_v17 = vsel %vm3300_vm7, 4294967295, %v4258_v17  ;;  %vm3304_vm13 = vcmp.ne.s32.totalorder %v1188_v0, 0  ;;  %v1494_v0 = vld [vmem:[%s1829_s17 + $0x40] sm:$0xff]  ;;  %v3372_v52 = vld [vmem:[%s1829_s17 + $0x58] sm:$0xff]  ;;  %v3383_v55 = vld [vmem:[%s1829_s17 + $0x68] sm:$0xff] }
 0x128   : > { %v1090_v63 = vmax.f32 %v1088_v59, %v1089_v58  ;;  %v4260_v16 = vmov 0  ;;  %vm3308_vm8 = vcmp.ne.s32.totalorder %v1192_v7, 0  ;;  %v4262_v19 = vmov 0 }
 0x129   : > { %v1106_v4 = vmax.f32 %v1104_v27, %v1105_v23  ;;  %v4261_v16 = vsel %vm3304_vm13, 4294967295, %v4260_v16  ;;  %v4263_v19 = vsel %vm3308_vm8, 4294967295, %v4262_v19  ;;  %v1241_v61 = vsel %vm3248_vm15, %v1486_v50, -inf  ;;  %v1498_v27 = vld [vmem:[%s1829_s17 + $0x60] sm:$0xff]  ;;  %v1500_v23 = vld [vmem:[%s1829_s17 + $0x70] sm:$0xff] }
 0x12a   : > { %v1242_v29 = vsel %vm3248_vm15, %v3316_v34, -inf  ;;  %v1243_v3 = vsel %vm3252_vm9, %v1488_v51, -inf  ;;  %vm4264_vm13 = vcmp.eq.s32.totalorder %v3164_v9, 1  ;;  %vm4265_vm8 = vcmp.eq.s32.totalorder %v3178_v11, 1  ;;  %v3398_v51 = vld [vmem:[%s1829_s17 + $0x88] sm:$0xff] }
 0x12b   : > { %v1063_v36 = vsel %vm4264_vm13, 0.0, %v1058_v57  ;;  %v1079_v32 = vsel %vm4265_vm8, 0.0, %v1074_v42  ;;  %vm4266_vm7 = vcmp.eq.s32.totalorder %v3182_v13, 1  ;;  %vm4267_vm5 = vcmp.eq.s32.totalorder %v3186_v54, 1  ;;  %v3343_v13 = vld [vmem:[%s1829_s17 + $0x28] sm:$0xff]  ;;  %v1501_v42 = vld [vmem:[%s1829_s17 + $0x78] sm:$0xff] }
 0x12c   : > { %v1095_v44 = vsel %vm4266_vm7, 0.0, %v1090_v63  ;;  %v1111_v45 = vsel %vm4267_vm5, 0.0, %v1106_v4  ;;  %vm4268_vm0 = vcmask 1040384   ;;  %v1244_v9 = vsel %vm3252_vm9, %v3334_v5, -inf  ;;  %v1502_v4 = vld [vmem:[%s1829_s17 + $0x80] sm:$0xff] }
 0x12d   : > { %v1112_v8 = vsel %vm4268_vm0, %v1063_v36, %v1079_v32  ;;  %v1245_v11 = vsel %vm3256_vm12, %v1490_v37, -inf  ;;  %v1246_v54 = vsel %vm3256_vm12, %v3343_v13, -inf  ;;  %vm4269_vm8 = vcmask 1041408   ;;  %v1504_v36 = vld [vmem:[%s1829_s17 + $0x90] sm:$0xff]  ;;  %v3413_v37 = vld [vmem:[%s1829_s17 + $0xa8] sm:$0xff] }
 0x12e   : > { %v1113_v28 = vsel %vm4269_vm8, %v1112_v8, %v1095_v44  ;;  %v1247_v43 = vsel %vm3260_vm14, %v1492_v24, -inf  ;;  %v1248_v22 = vsel %vm3260_vm14, %v3353_v6, -inf  ;;  %v1249_v7 = vsel %vm3264_vm1, %v1494_v0, -inf  ;;  %v1505_v44 = vld [vmem:[%s1829_s17 + $0x98] sm:$0xff] }
 0x12f   : > { %vm4270_vm13 = vcmask 1042432   ;;  %v1250_v31 = vsel %vm3264_vm1, %v3363_v35, -inf  ;;  %v1251_v39 = vsel %vm3268_vm2, %v1496_v30, -inf  ;;  %v1252_v59 = vsel %vm3268_vm2, %v3372_v52, -inf  ;;  %v1509_v0 = vld [vmem:[%s1829_s17 + $0xb8] sm:$0xff] }
 0x130   : > { %v1114_v49 = vsel %vm4270_vm13, %v1113_v28, %v1111_v45  ;;  %vm4271_vm7 = vcmask 60416   ;;  %v1253_v10 = vsel %vm3272_vm11, %v1498_v27, -inf  ;;  %v1254_v58 = vsel %vm3272_vm11, %v3383_v55, -inf  ;;  %v1506_v45 = vld [vmem:[%s1829_s17 + $0xa0] sm:$0xff]  ;;  %v1508_v28 = vld [vmem:[%s1829_s17 + $0xb0] sm:$0xff]  ;;  %v3428_v27 = vld [vmem:[%s1829_s17 + $0xc8] sm:$0xff] }
 0x131   : > { %1115 = vst.msk [vmem:[%s2651_s3 + $0x8] sm:$0xf] %vm4271_vm7, %v1114_v49  ;;  %v1255_v57 = vsel %vm3276_vm3, %v1500_v23, -inf  ;;  %v1256_v63 = vsel %vm3276_vm3, %v1501_v42, -inf  ;;  %v1257_v50 = vsel %vm3280_vm6, %v1502_v4, -inf  ;;  %v1258_v25 = vsel %vm3280_vm6, %v3398_v51, -inf }
 0x132   : > { %v1259_v32 = vsel %vm3284_vm10, %v1504_v36, -inf  ;;  %v1260_v14 = vsel %vm3284_vm10, %v1505_v44, -inf  ;;  %v1261_v8 = vsel %vm3288_vm4, %v1506_v45, -inf  ;;  %v1262_v56 = vsel %vm3288_vm4, %v3413_v37, -inf  ;;  %v1510_v49 = vld [vmem:[%s1829_s17 + $0xc0] sm:$0xff]  ;;  %v1512_v36 = vld [vmem:[%s1829_s17 + $0xd0] sm:$0xff] }
 0x133   : > { %vm4272_vm5 = vnez %v4255_v60  ;;  %vm4273_vm0 = vnez %v4257_v48  ;;  %vm4274_vm4 = vcmask 64512   ;;  %vm4280_vm13 = vnez %v4259_v17  ;;  %v1513_v45 = vld [vmem:[%s1829_s17 + $0xd8] sm:$0xff] }
 0x134   : > { %v1263_v24 = vsel %vm4272_vm5, %v1508_v28, -inf  ;;  %v1264_v46 = vsel %vm4272_vm5, %v1509_v0, -inf  ;;  %v1265_v30 = vsel %vm4273_vm0, %v1510_v49, -inf  ;;  %v1273_v55 = vsel %vm4274_vm4, %v1241_v61, -inf  ;;  %vm4275_vm10 = vmmov %vm4274_vm4  ;;  %v1514_v0 = vld [vmem:[%s1829_s17 + $0xe0] sm:$0xff] }
 0x135   : > { %v1274_v23 = vsel %vm4275_vm10, %v1243_v3, -inf  ;;  %vm4276_vm6 = vmmov %vm4274_vm4  ;;  %v1267_v44 = vsel %vm4280_vm13, %v1512_v36, -inf  ;;  %v1268_v37 = vsel %vm4280_vm13, %v1513_v45, -inf  ;;  %vm4281_vm7 = vnez %v4261_v16 }
 0x136   : > { %v1275_v42 = vsel %vm4276_vm6, %v1245_v11, -inf  ;;  %vm4277_vm3 = vmmov %vm4274_vm4  ;;  %v1269_v3 = vsel %vm4281_vm7, %v1514_v0, -inf  ;;  %v1515_v11 = vld [vmem:[%s1829_s17 + $0xf0] sm:$0xff]  ;;  %vm4282_vm5 = vnez %v4263_v19 }
 0x137   : > { %v1277_v60 = vsel %vm4277_vm3, %v1247_v43, -inf  ;;  %vm4278_vm11 = vmmov %vm4277_vm3  ;;  %v1276_v28 = vmax.f32 %v1273_v55, %v1275_v42  ;;  %v1271_v43 = vsel %vm4282_vm5, %v1515_v11, -inf  ;;  %v1289_v17 = vsel %vm4277_vm3, %v1259_v32, -inf }
 0x138   : > { %v1279_v4 = vsel %vm4278_vm11, %v1249_v7, -inf  ;;  %vm4279_vm8 = vmmov %vm4277_vm3  ;;  %v1278_v61 = vmax.f32 %v1274_v23, %v1277_v60 }
 0x139   : > { %v1281_v51 = vsel %vm4279_vm8, %v1251_v39, -inf  ;;  %vm4283_vm4 = vmmov %vm4277_vm3  ;;  %v1280_v49 = vmax.f32 %v1276_v28, %v1279_v4  ;;  %v1516_v4 = vld [vmem:[%s1829_s17 + $0xe8] sm:$0xff] }
 0x13a   : > { %v1283_v7 = vsel %vm4283_vm4, %v1253_v10, -inf  ;;  %vm4284_vm10 = vmmov %vm4277_vm3  ;;  %v1282_v36 = vmax.f32 %v1278_v61, %v1281_v51  ;;  %v1517_v51 = vld [vmem:[%s1829_s17 + $0xf8] sm:$0xff] }
 0x13b   : > { %v1285_v39 = vsel %vm4284_vm10, %v1255_v57, -inf  ;;  %vm4285_vm6 = vmmov %vm4277_vm3  ;;  %v1284_v57 = vmax.f32 %v1280_v49, %v1283_v7 }
 0x13c   : > { %v1287_v20 = vsel %vm4285_vm6, %v1257_v50, -inf  ;;  %vm4286_vm11 = vmmov %vm4277_vm3  ;;  %v1286_v50 = vmax.f32 %v1282_v36, %v1285_v39 }
 0x13d   : > { %v1291_v55 = vsel %vm4286_vm11, %v1261_v8, -inf  ;;  %vm4287_vm8 = vmmov %vm4277_vm3  ;;  %v1288_v5 = vmax.f32 %v1284_v57, %v1287_v20 }
 0x13e   : > { %v1293_v23 = vsel %vm4287_vm8, %v1263_v24, -inf  ;;  %vm4288_vm13 = vmmov %vm4277_vm3  ;;  %v1290_v62 = vmax.f32 %v1286_v50, %v1289_v17 }
 0x13f   : > { %v1304_v42 = vsel %vm4288_vm13, %v1242_v29, -inf  ;;  %vm4289_vm4 = vmmov %vm4277_vm3  ;;  %v1292_v35 = vmax.f32 %v1288_v5, %v1291_v55 }
 0x140   : > { %v1305_v10 = vsel %vm4289_vm4, %v1244_v9, -inf  ;;  %vm4290_vm10 = vmmov %vm4277_vm3  ;;  %v1294_v41 = vmax.f32 %v1290_v62, %v1293_v23 }
 0x141   : > { %v1306_v32 = vsel %vm4290_vm10, %v1246_v54, -inf  ;;  %vm4291_vm15 = vmmov %vm4277_vm3  ;;  %v1295_v54 = vsel %vm4277_vm3, %v1265_v30, -inf }
 0x142   : > { %v1308_v2 = vsel %vm4291_vm15, %v1248_v22, -inf  ;;  %v1307_v34 = vmax.f32 %v1304_v42, %v1306_v32  ;;  %vm4292_vm9 = vmmov %vm4277_vm3  ;;  %v1296_v24 = vmax.f32 %v1292_v35, %v1295_v54 }
 0x143   : > { %v1309_v1 = vmax.f32 %v1305_v10, %v1308_v2  ;;  %v1310_v29 = vsel %vm4292_vm9, %v1250_v31, -inf  ;;  %vm4293_vm12 = vmmov %vm4277_vm3 }
 0x144   : > { %v1312_v26 = vsel %vm4293_vm12, %v1252_v59, -inf  ;;  %vm4294_vm6 = vmmov %vm4277_vm3  ;;  %v1311_v6 = vmax.f32 %v1307_v34, %v1310_v29  ;;  %vm4309_vm12 = vnez %v3926_v47 }
 0x145   : > { %v1314_v9 = vsel %vm4294_vm6, %v1254_v58, -inf  ;;  %vm4295_vm14 = vmmov %vm4277_vm3  ;;  %v1313_v22 = vmax.f32 %v1309_v1, %v1312_v26  ;;  %vm4310_vm6 = vnez %v3941_v33 }
 0x146   : > { %v1316_v13 = vsel %vm4295_vm14, %v1256_v63, -inf  ;;  %vm4296_vm11 = vmmov %vm4277_vm3  ;;  %v1315_v8 = vmax.f32 %v1311_v6, %v1314_v9  ;;  %vm4311_vm14 = vnez %v3943_v21 }
 0x147   : > { %v1297_v12 = vsel %vm4296_vm11, %v1267_v44, -inf  ;;  %vm4297_vm1 = vmmov %vm4277_vm3  ;;  %v1317_v63 = vmax.f32 %v1313_v22, %v1316_v13 }
 0x148   : > { %v1318_v31 = vsel %vm4297_vm1, %v1258_v25, -inf  ;;  %vm4298_vm2 = vmmov %vm4297_vm1  ;;  %v1298_v30 = vmax.f32 %v1294_v41, %v1297_v12  ;;  %v1270_v25 = vsel %vm4281_vm7, %v1516_v4, -inf  ;;  %v1348_v41 = vstv %s1347_s24 }
 0x149   : > { %v1320_v52 = vsel %vm4298_vm2, %v1260_v14, -inf  ;;  %vm4299_vm8 = vmmov %vm4297_vm1  ;;  %v1272_v14 = vsel %vm4282_vm5, %v1517_v51, -inf  ;;  %v1319_v44 = vmax.f32 %v1315_v8, %v1318_v31  ;;  %v1364_v31 = vstv %s1363_s25 }
 0x14a   : > { %v1299_v59 = vsel %vm4299_vm8, %v1269_v3, -inf  ;;  %vm4300_vm13 = vmmov %vm4297_vm1  ;;  %v1321_v45 = vmax.f32 %v1317_v63, %v1320_v52  ;;  %vm4317_vm8 = vnez %v3947_v15  ;;  %v1380_v52 = vstv %s1379_s29 }
 0x14b   : > { %v1301_v58 = vsel %vm4300_vm13, %v1271_v43, -inf  ;;  %vm4301_vm4 = vmmov %vm4297_vm1  ;;  %v1300_v28 = vmax.f32 %v1296_v24, %v1299_v59  ;;  %vm4318_vm13 = vnez %v3951_v53  ;;  %v1396_v59 = vstv %s1395_s0 }
 0x14c   : > { %v1322_v20 = vsel %vm4301_vm4, %v1262_v56, -inf  ;;  %vm4302_vm10 = vmmov %vm4297_vm1  ;;  %v1302_v61 = vmax.f32 %v1298_v30, %v1301_v58  ;;  %v4303_v56 = vsel %vm4273_vm0, %v3428_v27, -inf  ;;  %vm4308_vm0 = vnez %v3919_v38 }
 0x14d   : > { %v1324_v60 = vsel %vm4302_vm10, %v1264_v46, -inf  ;;  %vm4304_vm15 = vmmov %vm4297_vm1  ;;  %v1323_v16 = vmax.f32 %v1319_v44, %v1322_v20  ;;  %vm4319_vm4 = vnez %v3956_v18  ;;  %vm4321_vm10 = vnez %v3960_v40 }
 0x14e   : > { %v1326_v46 = vsel %vm4304_vm15, %v4303_v56, -inf  ;;  %vm4305_vm9 = vmmov %vm4297_vm1  ;;  %v1325_v3 = vmax.f32 %v1321_v45, %v1324_v60  ;;  %v1303_v19 = vmax.f32 %v1300_v28, %v1302_v61 }
 0x14f   : > { %v1328_v0 = vsel %vm4305_vm9, %v1268_v37, -inf  ;;  %vm4306_vm7 = vmmov %vm4297_vm1  ;;  %v1327_v27 = vmax.f32 %v1323_v16, %v1326_v46 }
 0x150   : > { %v1330_v11 = vsel %vm4306_vm7, %v1270_v25, -inf  ;;  %vm4307_vm5 = vmmov %vm4297_vm1  ;;  %v1329_v43 = vmax.f32 %v1325_v3, %v1328_v0  ;;  %v1335_v37 = vsel %vm4308_vm0, %v1303_v19, -inf  ;;  %v1351_v7 = vsel %vm4309_vm12, %v1303_v19, -inf }
 0x151   : > { %v1332_v48 = vsel %vm4307_vm5, %v1272_v14, -inf  ;;  %v1331_v39 = vmax.f32 %v1327_v27, %v1330_v11  ;;  %v1367_v36 = vsel %vm4310_vm6, %v1303_v19, -inf  ;;  %v1383_v17 = vsel %vm4311_vm14, %v1303_v19, -inf  ;;  %vm4313_vm3 = vmmov %vm4297_vm1 }
 0x152   : > { %v1333_v49 = vmax.f32 %v1329_v43, %v1332_v48  ;;  %v1337_v38 = vsel %vm4313_vm3, %v1335_v37, -inf  ;;  %vm4314_vm11 = vmmov %vm4297_vm1  ;;  %v1369_v33 = vsel %vm4297_vm1, %v1367_v36, -inf  ;;  %vm1349_vm0 = vcmp.eq.s32.totalorder %v1348_v41, 1 }
 0x153   : > { %v1353_v47 = vsel %vm4314_vm11, %v1351_v7, -inf  ;;  %vm4316_vm2 = vmmov %vm4297_vm1  ;;  %vm1365_vm12 = vcmp.eq.s32.totalorder %v1364_v31, 1  ;;  %vm1381_vm6 = vcmp.eq.s32.totalorder %v1380_v52, 1  ;;  %vm1397_vm14 = vcmp.eq.s32.totalorder %v1396_v59, 1 }
 0x154   : > { %v1334_v55 = vmax.f32 %v1331_v39, %v1333_v49  ;;  %v1385_v21 = vsel %vm4316_vm2, %v1383_v17, -inf  ;;  %vm4322_vm15 = vmmov %vm4297_vm1  ;;  %vm4327_vm3 = vcmask 1040384   ;;  %vm4328_vm11 = vcmask 1041408  }
 0x155   : > { %vm4323_vm9 = vmmov %vm4297_vm1  ;;  %vm4330_vm2 = vcmask 60416  }
 0x156   : > { %v1336_v23 = vsel %vm4317_vm8, %v1334_v55, -inf  ;;  %v1352_v42 = vsel %vm4318_vm13, %v1334_v55, -inf  ;;  %v1368_v10 = vsel %vm4319_vm4, %v1334_v55, -inf  ;;  %v1384_v57 = vsel %vm4321_vm10, %v1334_v55, -inf  ;;  %vm4324_vm7 = vmmov %vm4297_vm1 }
 0x157   : > { %v1338_v15 = vsel %vm4322_vm15, %v1336_v23, -inf  ;;  %v1354_v50 = vsel %vm4323_vm9, %v1352_v42, -inf  ;;  %v1370_v53 = vsel %vm4324_vm7, %v1368_v10, -inf  ;;  %vm4325_vm5 = vmmov %vm4297_vm1  ;;  %vm4329_vm1 = vcmask 1042432  }
 0x158   : > { %v1386_v32 = vsel %vm4325_vm5, %v1384_v57, -inf  ;;  %v1339_v18 = vmax.f32 %v1337_v38, %v1338_v15  ;;  %v1355_v40 = vmax.f32 %v1353_v47, %v1354_v50  ;;  %v1371_v2 = vmax.f32 %v1369_v33, %v1370_v53 }
 0x159   : > { %v1387_v34 = vmax.f32 %v1385_v21, %v1386_v32 }
 0x15a   : > { %v1340_v1 = vrot.slane %v1339_v18, 4  ;;  %v1356_v29 = vrot.slane %v1355_v40, 4  ;;  %v1372_v26 = vrot.slane %v1371_v2, 4 }
 0x15b   : > { %v1388_v5 = vrot.slane %v1387_v34, 4 }
 0x15c   : > { %v1341_v62 = vmax.f32 %v1339_v18, %v1340_v1  ;;  %v1357_v9 = vmax.f32 %v1355_v40, %v1356_v29  ;;  %v1373_v13 = vmax.f32 %v1371_v2, %v1372_v26 }
 0x15d   : > { %v1389_v54 = vmax.f32 %v1387_v34, %v1388_v5 }
 0x15e   : > { %v1342_v12 = vrot.slane %v1341_v62, 2  ;;  %v1358_v6 = vrot.slane %v1357_v9, 2  ;;  %v1374_v22 = vrot.slane %v1373_v13, 2 }
 0x15f   : > { %v1390_v35 = vrot.slane %v1389_v54, 2 }
 0x160   : > { %v1343_v58 = vmax.f32 %v1341_v62, %v1342_v12  ;;  %v1359_v8 = vmax.f32 %v1357_v9, %v1358_v6  ;;  %v1375_v63 = vmax.f32 %v1373_v13, %v1374_v22 }
 0x161   : > { %v1391_v24 = vmax.f32 %v1389_v54, %v1390_v35 }
 0x162   : > { %v1344_v30 = vrot.slane %v1343_v58, 1  ;;  %v1360_v20 = vrot.slane %v1359_v8, 1  ;;  %v1376_v60 = vrot.slane %v1375_v63, 1 }
 0x163   : > { %v1392_v4 = vrot.slane %v1391_v24, 1 }
 0x164   : > { %v1345_v25 = vmax.f32 %v1343_v58, %v1344_v30  ;;  %v1361_v51 = vmax.f32 %v1359_v8, %v1360_v20  ;;  %v1377_v14 = vmax.f32 %v1375_v63, %v1376_v60 }
 0x165   : > { %v1393_v44 = vmax.f32 %v1391_v24, %v1392_v4 }
 0x166   : > { %v1350_v45 = vsel %vm1349_vm0, 0.0, %v1345_v25  ;;  %v1366_v28 = vsel %vm1365_vm12, 0.0, %v1361_v51  ;;  %v1382_v61 = vsel %vm1381_vm6, 0.0, %v1377_v14 }
 0x167   : > { %v1398_v56 = vsel %vm1397_vm14, 0.0, %v1393_v44  ;;  %v1399_v46 = vsel %vm4327_vm3, %v1350_v45, %v1366_v28 }
 0x168   : > { %v1400_v0 = vsel %vm4328_vm11, %v1399_v46, %v1382_v61 }
 0x169   : > { %v1401_v16 = vsel %vm4329_vm1, %v1400_v0, %v1398_v56 }
 0x16a   : > { %1402 = vst.msk [vmem:[%s2651_s3 + $0xc] sm:$0xf] %vm4330_vm2, %v1401_v16 }
 0x16b PF: > { %s38_s18 = sadd.s32 1, %s1586_s18  }
 0x16c   : > { %p35_p5 = scmp.ge.s32.totalorder %s38_s18, 38  }
 0x16e   :  { %37 = sbr.rel (!%p35_p5) target bundleno = 57 (0x39), region = 54 }

</bundles_post_ra>
